<compile_context>
chip_gen: v7x
topology: tpu7x:2x2x1
jax: 0.10.0
libtpu: 0.0.40
codegen_flags: <defaults>
</compile_context>

<pallas_src>
import functools

import jax
import jax.numpy as jnp
from jax.experimental import pallas as pl
from jax.experimental.pallas import tpu as pltpu


def _round_up(x, m):
    return ((x + m - 1) // m) * m


def _choose_tile_b(B, max_tile=1024):
    """Pick a batch tile: 256-multiple (fills v6e/v7x MXU M; 128 ok for v5e),
    capped to bound f32 intermediate (tile_b x 64) vreg/VMEM pressure."""
    tile = min(max_tile, _round_up(max(B, 1), 256))
    # Prefer >= 2 grid steps when the batch allows it so v7x can shard the
    # parallel batch axis across its 2 TensorCores.
    half = tile // 2
    if _round_up(B, tile) == tile and tile >= 256 and pl.cdiv(B, half) >= 2:
        tile = half
    return tile


def _leaky_relu(x, slope=0.2):
    return jnp.where(x > 0, x, slope * x)


def _mlp_kernel(x_ref, w1_ref, b1_ref, w2_ref, b2_ref, w3_ref, b3_ref, o_ref):
    """Fused forward pass for one (tile_b, phase_dim) batch tile."""
    x = x_ref[...]                                                    # (tb, P) f32

    # Linear(P, 64) + LeakyReLU(0.2)   -- MXU
    h1 = jnp.dot(x, w1_ref[...], preferred_element_type=jnp.float32) + b1_ref[...]
    h1 = _leaky_relu(h1)

    # Linear(64, 32) + LeakyReLU(0.2)  -- MXU
    h2 = jnp.dot(h1, w2_ref[...], preferred_element_type=jnp.float32) + b2_ref[...]
    h2 = _leaky_relu(h2)

    # Linear(32, 1) + Sigmoid          -- VPU mul + lane reduce (no MXU pass)
    h3 = jnp.sum(h2 * w3_ref[...], axis=-1) + b3_ref[0]               # (tb,)
    o_ref[...] = jax.nn.sigmoid(h3)[None, :]                          # (1, tb) lane-dense


@functools.partial(jax.jit, static_argnames=("tile_b",))
def trans_discriminator_forward(phase, params, tile_b=None):
    """phase: (B, phase_dim) -> validity: (B, 1) float32."""
    phase = jnp.asarray(phase, jnp.float32)  # mirrors torch.tensor(phase, float32)
    w1, b1, w2, b2, w3, b3 = params
    B, phase_dim = phase.shape

    if tile_b is None:
        tile_b = _choose_tile_b(B)
    tile_b = _round_up(tile_b, 128)          # lane-dense output + sublane-aligned input

    num_tiles = pl.cdiv(B, tile_b)
    padded_b = num_tiles * tile_b
    if padded_b != B:
        phase = jnp.pad(phase, ((0, padded_b - B), (0, 0)))

    w3_row = w3.reshape(1, -1).astype(jnp.float32)   # (1, 32) row for VPU mul
    b3_s = b3.reshape(-1).astype(jnp.float32)        # (1,) scalar in SMEM

    x_map = lambda i: (i, 0)
    const_map = lambda i: (0, 0)
    out_map = lambda i: (0, i)

    out_row = pl.pallas_call(
        _mlp_kernel,
        out_shape=jax.ShapeDtypeStruct((1, padded_b), jnp.float32),
        grid_spec=pltpu.PrefetchScalarGridSpec(
            num_scalar_prefetch=0,
            grid=(num_tiles,),
            in_specs=[
                pl.BlockSpec((tile_b, phase_dim), x_map),                 # x tile
                pl.BlockSpec((phase_dim, 64), const_map),                 # W1
                pl.BlockSpec((1, 64), const_map),                         # b1
                pl.BlockSpec((64, 32), const_map),                        # W2
                pl.BlockSpec((1, 32), const_map),                         # b2
                pl.BlockSpec((1, 32), const_map),                         # W3 (as row)
                pl.BlockSpec(memory_space=pltpu.MemorySpace.SMEM),        # b3 scalar
            ],
            out_specs=pl.BlockSpec((1, tile_b), out_map),                 # lane-dense row
        ),
        compiler_params=pltpu.CompilerParams(
            dimension_semantics=("parallel",)
        ),
    )(phase,
      w1.astype(jnp.float32), b1.astype(jnp.float32),
      w2.astype(jnp.float32), b2.astype(jnp.float32),
      w3_row, b3_s)

    # layout plumbing only: (1, padded_b) row -> (B, 1) column
    return out_row.reshape(-1)[:B].reshape(B, 1)


def init_params(key, phase_dim):
    """Deterministic init matching nn.Linear's default U(-1/sqrt(fan_in), 1/sqrt(fan_in))."""
    dims = [(phase_dim, 64), (64, 32), (32, 1)]
    params = []
    for (fan_in, fan_out) in dims:
        key, kw, kb = jax.random.split(key, 3)
        bound = 1.0 / jnp.sqrt(jnp.float32(fan_in))
        w = jax.random.uniform(kw, (fan_in, fan_out), jnp.float32, -bound, bound)
        b = jax.random.uniform(kb, (1, fan_out), jnp.float32, -bound, bound)
        params += [w, b]
    return tuple(params)


def reference_forward(phase, params):
    """Pure-JAX reference for sanity checking."""
    w1, b1, w2, b2, w3, b3 = params
    x = phase.astype(jnp.float32)
    h = x @ w1 + b1
    h = jnp.where(h > 0, h, 0.2 * h)
    h = h @ w2 + b2
    h = jnp.where(h > 0, h, 0.2 * h)
    h = h @ w3 + b3
    return jax.nn.sigmoid(h)


if __name__ == "__main__":
    key = jax.random.PRNGKey(0)
    k_param, k_x1, k_x2 = jax.random.split(key, 3)

    phase_dim = 16   # TransDiscriminator(phase_dim=16)
    params = init_params(k_param, phase_dim)

    # Small demo batch (single padded tile).
    B = 8
    phase = jax.random.normal(k_x1, (B, phase_dim), jnp.float32)
    out = jax.block_until_ready(trans_discriminator_forward(phase, params))
    ref = reference_forward(phase, params)
    assert out.shape == (B, 1)
    assert jnp.max(jnp.abs(out - ref)) < 1e-5, "mismatch vs reference (B=8)"

    # Ragged batch: exercises multi-tile grid + zero-padded tail.
    B2 = 300
    phase2 = jax.random.normal(k_x2, (B2, phase_dim), jnp.float32)
    out2 = jax.block_until_ready(trans_discriminator_forward(phase2, params))
    ref2 = reference_forward(phase2, params)
    assert out2.shape == (B2, 1)
    assert jnp.max(jnp.abs(out2 - ref2)) < 1e-5, "mismatch vs reference (B=300)"

    print("KERNEL_OK")
</pallas_src>

<mosaic_0001>
module attributes {stable_mosaic.version = 11 : i64} {
  func.func @_mlp_kernel(%arg0: i32, %arg1: memref<256x16xf32, #tpu.memory_space<vmem>>, %arg2: memref<16x64xf32, #tpu.memory_space<vmem>>, %arg3: memref<1x64xf32, #tpu.memory_space<vmem>>, %arg4: memref<64x32xf32, #tpu.memory_space<vmem>>, %arg5: memref<1x32xf32, #tpu.memory_space<vmem>>, %arg6: memref<1x32xf32, #tpu.memory_space<vmem>>, %arg7: memref<1xf32, #tpu.memory_space<smem>>, %arg8: memref<1x256xf32, #tpu.memory_space<vmem>>) attributes {dimension_semantics = [#tpu.dimension_semantics<parallel>], iteration_bounds = array<i64: 1>, scalar_prefetch = 0 : i64, scratch_operands = 0 : i64, tpu.core_type = #tpu.core_type<tc>, window_params = [{transform_indices = @transform_0, window_bounds = array<i64: 256, 16>}, {pipeline_mode = #tpu.pipeline_mode<synchronous>, transform_indices = @transform_1, window_bounds = array<i64: 16, 64>}, {pipeline_mode = #tpu.pipeline_mode<synchronous>, transform_indices = @transform_2, window_bounds = array<i64: 1, 64>}, {pipeline_mode = #tpu.pipeline_mode<synchronous>, transform_indices = @transform_3, window_bounds = array<i64: 64, 32>}, {pipeline_mode = #tpu.pipeline_mode<synchronous>, transform_indices = @transform_4, window_bounds = array<i64: 1, 32>}, {pipeline_mode = #tpu.pipeline_mode<synchronous>, transform_indices = @transform_5, window_bounds = array<i64: 1, 32>}, {transform_indices = @transform_6, window_bounds = array<i64: 1>}, {transform_indices = @transform_7, window_bounds = array<i64: 1, 256>}]} {
    %c0 = arith.constant 0 : index
    %c0_0 = arith.constant 0 : index
    %0 = vector.load %arg1[%c0, %c0_0] : memref<256x16xf32, #tpu.memory_space<vmem>>, vector<256x16xf32>
    %c0_1 = arith.constant 0 : index
    %c0_2 = arith.constant 0 : index
    %1 = vector.load %arg2[%c0_1, %c0_2] : memref<16x64xf32, #tpu.memory_space<vmem>>, vector<16x64xf32>
    %cst = arith.constant dense<0.000000e+00> : vector<256x64xf32>
    %2 = tpu.matmul %0, %1, %cst {dimension_numbers = #tpu.dot_dimension_numbers<[1], [0], [0], [1], [0, 0, 1, 1], [], []>} : vector<256x16xf32>, vector<16x64xf32>, vector<256x64xf32> -> vector<256x64xf32>
    %c0_3 = arith.constant 0 : index
    %c0_4 = arith.constant 0 : index
    %3 = vector.load %arg3[%c0_3, %c0_4] : memref<1x64xf32, #tpu.memory_space<vmem>>, vector<1x64xf32>
    %4 = vector.broadcast %3 : vector<1x64xf32> to vector<256x64xf32>
    %5 = arith.addf %2, %4 : vector<256x64xf32>
    %cst_5 = arith.constant 0.000000e+00 : f32
    %6 = vector.broadcast %cst_5 : f32 to vector<256x64xf32>
    %7 = arith.cmpf ogt, %5, %6 : vector<256x64xf32>
    %cst_6 = arith.constant 2.000000e-01 : f32
    %8 = vector.broadcast %cst_6 : f32 to vector<256x64xf32>
    %9 = arith.mulf %8, %5 : vector<256x64xf32>
    %10 = arith.select %7, %5, %9 : vector<256x64xi1>, vector<256x64xf32>
    %c0_7 = arith.constant 0 : index
    %c0_8 = arith.constant 0 : index
    %11 = vector.load %arg4[%c0_7, %c0_8] : memref<64x32xf32, #tpu.memory_space<vmem>>, vector<64x32xf32>
    %cst_9 = arith.constant dense<0.000000e+00> : vector<256x32xf32>
    %12 = tpu.matmul %10, %11, %cst_9 {dimension_numbers = #tpu.dot_dimension_numbers<[1], [0], [0], [1], [0, 0, 1, 1], [], []>} : vector<256x64xf32>, vector<64x32xf32>, vector<256x32xf32> -> vector<256x32xf32>
    %c0_10 = arith.constant 0 : index
    %c0_11 = arith.constant 0 : index
    %13 = vector.load %arg5[%c0_10, %c0_11] : memref<1x32xf32, #tpu.memory_space<vmem>>, vector<1x32xf32>
    %14 = vector.broadcast %13 : vector<1x32xf32> to vector<256x32xf32>
    %15 = arith.addf %12, %14 : vector<256x32xf32>
    %cst_12 = arith.constant 0.000000e+00 : f32
    %16 = vector.broadcast %cst_12 : f32 to vector<256x32xf32>
    %17 = arith.cmpf ogt, %15, %16 : vector<256x32xf32>
    %cst_13 = arith.constant 2.000000e-01 : f32
    %18 = vector.broadcast %cst_13 : f32 to vector<256x32xf32>
    %19 = arith.mulf %18, %15 : vector<256x32xf32>
    %20 = arith.select %17, %15, %19 : vector<256x32xi1>, vector<256x32xf32>
    %c0_14 = arith.constant 0 : index
    %c0_15 = arith.constant 0 : index
    %21 = vector.load %arg6[%c0_14, %c0_15] : memref<1x32xf32, #tpu.memory_space<vmem>>, vector<1x32xf32>
    %22 = vector.broadcast %21 : vector<1x32xf32> to vector<256x32xf32>
    %23 = arith.mulf %20, %22 : vector<256x32xf32>
    %cst_16 = arith.constant dense<0.000000e+00> : vector<256xf32>
    %24 = vector.multi_reduction <add>, %23, %cst_16 [1] : vector<256x32xf32> to vector<256xf32>
    %c0_17 = arith.constant 0 : index
    %25 = memref.load %arg7[%c0_17] : memref<1xf32, #tpu.memory_space<smem>>
    %26 = vector.broadcast %25 : f32 to vector<256xf32>
    %27 = arith.addf %24, %26 : vector<256xf32>
    %28 = arith.negf %27 : vector<256xf32>
    %29 = math.exp %28 : vector<256xf32>
    %cst_18 = arith.constant 1.000000e+00 : f32
    %30 = vector.broadcast %cst_18 : f32 to vector<256xf32>
    %31 = arith.addf %30, %29 : vector<256xf32>
    %32 = arith.divf %30, %31 : vector<256xf32>
    %33 = vector.shape_cast %32 : vector<256xf32> to vector<1x256xf32>
    %c0_19 = arith.constant 0 : index
    %c0_20 = arith.constant 0 : index
    %34 = vector.load %arg8[%c0_19, %c0_20] : memref<1x256xf32, #tpu.memory_space<vmem>>, vector<1x256xf32>
    tpu.vector_store %arg8[%c0_19, %c0_20], %33 {strides = array<i32>} : memref<1x256xf32, #tpu.memory_space<vmem>>, vector<1x256xf32>,
    return
  }
  func.func @transform_0(%arg0: i32) -> (i32, i32) {
    %c0_i32 = arith.constant 0 : i32
    %c0_i32_0 = arith.constant 0 : i32
    return %arg0, %c0_i32 : i32, i32
  }
  func.func @transform_1(%arg0: i32) -> (i32, i32) {
    %c0_i32 = arith.constant 0 : i32
    %c0_i32_0 = arith.constant 0 : i32
    %c0_i32_1 = arith.constant 0 : i32
    return %c0_i32, %c0_i32_0 : i32, i32
  }
  func.func @transform_2(%arg0: i32) -> (i32, i32) {
    %c0_i32 = arith.constant 0 : i32
    %c0_i32_0 = arith.constant 0 : i32
    %c0_i32_1 = arith.constant 0 : i32
    return %c0_i32, %c0_i32_0 : i32, i32
  }
  func.func @transform_3(%arg0: i32) -> (i32, i32) {
    %c0_i32 = arith.constant 0 : i32
    %c0_i32_0 = arith.constant 0 : i32
    %c0_i32_1 = arith.constant 0 : i32
    return %c0_i32, %c0_i32_0 : i32, i32
  }
  func.func @transform_4(%arg0: i32) -> (i32, i32) {
    %c0_i32 = arith.constant 0 : i32
    %c0_i32_0 = arith.constant 0 : i32
    %c0_i32_1 = arith.constant 0 : i32
    return %c0_i32, %c0_i32_0 : i32, i32
  }
  func.func @transform_5(%arg0: i32) -> (i32, i32) {
    %c0_i32 = arith.constant 0 : i32
    %c0_i32_0 = arith.constant 0 : i32
    %c0_i32_1 = arith.constant 0 : i32
    return %c0_i32, %c0_i32_0 : i32, i32
  }
  func.func @transform_6(%arg0: i32) -> i32 {
    %c0_i32 = arith.constant 0 : i32
    %c0_i32_0 = arith.constant 0 : i32
    return %c0_i32 : i32
  }
  func.func @transform_7(%arg0: i32) -> (i32, i32) {
    %c0_i32 = arith.constant 0 : i32
    %c0_i32_0 = arith.constant 0 : i32
    return %c0_i32, %arg0 : i32, i32
  }
}

</mosaic_0001>

<bundles_post_ra>
// kernel: trans_discriminator_forward.1
= control target key start
LH: loop header
LB: loop body
LE: loop exit
PB: predicated region body
PF: predicated region fallthrough
CT: control target
= control target key end

     0   :  { %vm68_vm0 = vcmask 130048   ;;  %vm501_vm3 = vcmask 523264   ;;  %s5971_s1 = inlined_call_operand.vmem [shape: f32[16,64], index: 1, kind: input, shape index: {}]   ;;  %s5972_s0 = inlined_call_operand.vmem [shape: f32[256,16], index: 0, kind: input, shape index: {}]   ;;  %s5973_s3 = inlined_call_operand.vmem [shape: f32[64,32], index: 3, kind: input, shape index: {}]   ;;  %s5974_s2 = inlined_call_operand.vmem [shape: f32[1,64], index: 2, kind: input, shape index: {}]   ;;  %s5975_s4 = inlined_call_operand.vmem [shape: f32[1,32], index: 4, kind: input, shape index: {}]   ;;  %s5976_s5 = inlined_call_operand.vmem [shape: f32[1,32], index: 5, kind: input, shape index: {}]   ;;  %s5977_s6 = inlined_call_operand.<no memory space> [shape: f32[1], index: 6, kind: input, shape index: {}]   ;;  %s5978_s7 = inlined_call_operand.vmem [shape: f32[1,256], index: 7, kind: output, shape index: {}]  }
   0x1   :  { %v59_v0 = vld [vmem:[%s5971_s1] sm:$0xff]  ;;  %v60_v1 = vld [vmem:[%s5971_s1 + $0x8] sm:$0xff]  ;;  %v29_v5 = vld [vmem:[%s5972_s0 + $0x10] sm:$0xff] }
   0x2   :  { %v27_v2 = vld [vmem:[%s5972_s0] sm:$0xff]  ;;  %v4505_v3 = vpack.c.bf16 %v60_v1, %v59_v0  ;;  %v28_v4 = vld [vmem:[%s5972_s0 + $0x8] sm:$0xff]  ;;  %v30_v6 = vld [vmem:[%s5972_s0 + $0x18] sm:$0xff] }
   0x3   :  { %4393 = vmatprep.mubr.msk.f32.mxu0 %vm68_vm0, %v27_v2  ;;  %v31_v7 = vld [vmem:[%s5972_s0 + $0x20] sm:$0xff]  ;;  %v487_v9 = vld [vmem:[%s5973_s3 + $0x8] sm:$0xff]  ;;  %v488_v12 = vld [vmem:[%s5973_s3 + $0x10] sm:$0xff] }
   0x4   :  { %4506 = vmatprep.subr.bf16.mxu0 %v4505_v3  ;;  %v486_v8 = vld [vmem:[%s5973_s3] sm:$0xff]  ;;  %v32_v10 = vld [vmem:[%s5972_s0 + $0x28] sm:$0xff]  ;;  %v489_v13 = vld [vmem:[%s5973_s3 + $0x18] sm:$0xff] }
   0x5   :  { %4508 = vmatpush3.bf16.msra.mxu0 %v4505_v3  ;;  %v4509_v11 = vpack.c.bf16 %v487_v9, %v486_v8  ;;  %v33_v14 = vld [vmem:[%s5972_s0 + $0x30] sm:$0xff]  ;;  %v4513_v15 = vpack.c.bf16 %v489_v13, %v488_v12  ;;  %v490_v16 = vld [vmem:[%s5973_s3 + $0x20] sm:$0xff]  ;;  %v491_v17 = vld [vmem:[%s5973_s3 + $0x28] sm:$0xff] }
   0x6   :  { %v34_v18 = vld [vmem:[%s5972_s0 + $0x38] sm:$0xff]  ;;  %v35_v19 = vld [vmem:[%s5972_s0 + $0x40] sm:$0xff]  ;;  %v4517_v20 = vpack.c.bf16 %v491_v17, %v490_v16  ;;  %v492_v21 = vld [vmem:[%s5973_s3 + $0x30] sm:$0xff] }
   0x7   :  { %4510 = vmatprep.subr.bf16.mxu0 %v4509_v11  ;;  %4525 = vmatprep.subr.bf16.mxu1 %v4509_v11  ;;  %v493_v22 = vld [vmem:[%s5973_s3 + $0x38] sm:$0xff]  ;;  %v36_v23 = vld [vmem:[%s5972_s0 + $0x48] sm:$0xff]  ;;  %v37_v24 = vld [vmem:[%s5972_s0 + $0x50] sm:$0xff] }
   0x8   :  { %4394 = vmatmul.mubr.msk.f32.vlgmr.msra.gmra.mrb[0].mxu0 %vm68_vm0, %v28_v4  ;;  %4529 = vmatpush3.bf16.msra.mxu1 %v4509_v11  ;;  %v4521_v25 = vpack.c.bf16 %v493_v22, %v492_v21  ;;  %v38_v26 = vld [vmem:[%s5972_s0 + $0x58] sm:$0xff]  ;;  %v39_v27 = vld [vmem:[%s5972_s0 + $0x60] sm:$0xff]  ;;  %v40_v28 = vld [vmem:[%s5972_s0 + $0x68] sm:$0xff] }
   0x9   :  { %4396 = vmatprep.mubr.msk.f32.mxu0 %vm68_vm0, %v29_v5  ;;  %4512 = vmatpush3.bf16.msra.mxu0 %v4509_v11  ;;  %v41_v29 = vld [vmem:[%s5972_s0 + $0x70] sm:$0xff]  ;;  %v42_v30 = vld [vmem:[%s5972_s0 + $0x78] sm:$0xff]  ;;  %v43_v31 = vld [vmem:[%s5972_s0 + $0x80] sm:$0xff] }
   0xa   :  { %4514 = vmatprep.subr.bf16.mxu0 %v4513_v15  ;;  %4526 = vmatprep.subr.bf16.mxu1 %v4513_v15  ;;  %v44_v32 = vld [vmem:[%s5972_s0 + $0x88] sm:$0xff]  ;;  %v45_v33 = vld [vmem:[%s5972_s0 + $0x90] sm:$0xff]  ;;  %v46_v34 = vld [vmem:[%s5972_s0 + $0x98] sm:$0xff] }
   0xb   :  { %v47_v35 = vld [vmem:[%s5972_s0 + $0xa0] sm:$0xff]  ;;  %v48_v36 = vld [vmem:[%s5972_s0 + $0xa8] sm:$0xff]  ;;  %v49_v37 = vld [vmem:[%s5972_s0 + $0xb0] sm:$0xff] }
   0xc   :  { %4397 = vmatmul.mubr.msk.f32.gmra.mrb[2].mxu0 %vm68_vm0, %v30_v6  ;;  %4530 = vmatpush3.bf16.msra.mxu1 %v4513_v15  ;;  %v50_v38 = vld [vmem:[%s5972_s0 + $0xb8] sm:$0xff]  ;;  %v51_v39 = vld [vmem:[%s5972_s0 + $0xc0] sm:$0xff]  ;;  %v52_v40 = vld [vmem:[%s5972_s0 + $0xc8] sm:$0xff] }
   0xd   :  { %4399 = vmatprep.mubr.msk.f32.mxu0 %vm68_vm0, %v31_v7  ;;  %4516 = vmatpush3.bf16.msra.mxu0 %v4513_v15  ;;  %v53_v41 = vld [vmem:[%s5972_s0 + $0xd0] sm:$0xff]  ;;  %v54_v42 = vld [vmem:[%s5972_s0 + $0xd8] sm:$0xff]  ;;  %v55_v43 = vld [vmem:[%s5972_s0 + $0xe0] sm:$0xff] }
   0xe   :  { %4518 = vmatprep.subr.bf16.mxu0 %v4517_v20  ;;  %4527 = vmatprep.subr.bf16.mxu1 %v4517_v20  ;;  %v56_v44 = vld [vmem:[%s5972_s0 + $0xe8] sm:$0xff]  ;;  %v57_v45 = vld [vmem:[%s5972_s0 + $0xf0] sm:$0xff]  ;;  %v58_v46 = vld [vmem:[%s5972_s0 + $0xf8] sm:$0xff] }
   0xf   :  { %v4868_v47 = vld [vmem:[%s5974_s2] ss:$0 sm:$0xff] }
  0x10   :  { %4400 = vmatmul.mubr.msk.f32.gmra.mrb[4].mxu0 %vm68_vm0, %v32_v10  ;;  %4531 = vmatpush3.bf16.msra.mxu1 %v4517_v20 }
  0x11   :  { %4402 = vmatprep.mubr.msk.f32.mxu0 %vm68_vm0, %v33_v14  ;;  %4520 = vmatpush3.bf16.msra.mxu0 %v4517_v20 }
  0x12   :  { %4522 = vmatprep.subr.bf16.mxu0 %v4521_v25  ;;  %4528 = vmatprep.subr.bf16.mxu1 %v4521_v25 }
  0x14   :  { %4403 = vmatmul.mubr.msk.f32.gmra.mrb[6].mxu0 %vm68_vm0, %v34_v18  ;;  %4532 = vmatpush3.bf16.msra.mxu1 %v4521_v25 }
  0x15   :  { %4405 = vmatprep.mubr.msk.f32.mxu0 %vm68_vm0, %v35_v19  ;;  %4524 = vmatpush3.bf16.msra.mxu0 %v4521_v25 }
  0x18   :  { %4406 = vmatmul.mubr.msk.f32.gmra.mrb[8].mxu0 %vm68_vm0, %v36_v23 }
  0x19   :  { %4408 = vmatprep.mubr.msk.f32.mxu0 %vm68_vm0, %v37_v24 }
  0x1c   :  { %4409 = vmatmul.mubr.msk.f32.gmra.mrb[10].mxu0 %vm68_vm0, %v38_v26 }
  0x1d   :  { %4411 = vmatprep.mubr.msk.f32.mxu0 %vm68_vm0, %v39_v27 }
  0x20   :  { %4412 = vmatmul.mubr.msk.f32.gmra.mrb[12].mxu0 %vm68_vm0, %v40_v28 }
  0x21   :  { %4414 = vmatprep.mubr.msk.f32.mxu0 %vm68_vm0, %v41_v29 }
  0x24   :  { %4415 = vmatmul.mubr.msk.f32.gmra.mrb[14].mxu0 %vm68_vm0, %v42_v30 }
  0x25   :  { %4417 = vmatprep.mubr.msk.f32.mxu0 %vm68_vm0, %v43_v31 }
  0x28   :  { %4418 = vmatmul.mubr.msk.f32.gmra.mrb[16].mxu0 %vm68_vm0, %v44_v32 }
  0x29   :  { %4420 = vmatprep.mubr.msk.f32.mxu0 %vm68_vm0, %v45_v33 }
  0x2c   :  { %4421 = vmatmul.mubr.msk.f32.gmra.mrb[18].mxu0 %vm68_vm0, %v46_v34 }
  0x2d   :  { %4423 = vmatprep.mubr.msk.f32.mxu0 %vm68_vm0, %v47_v35 }
  0x30   :  { %4424 = vmatmul.mubr.msk.f32.gmra.mrb[20].mxu0 %vm68_vm0, %v48_v36 }
  0x31   :  { %4426 = vmatprep.mubr.msk.f32.mxu0 %vm68_vm0, %v49_v37 }
  0x34   :  { %4427 = vmatmul.mubr.msk.f32.gmra.mrb[22].mxu0 %vm68_vm0, %v50_v38 }
  0x35   :  { %4429 = vmatprep.mubr.msk.f32.mxu0 %vm68_vm0, %v51_v39 }
  0x38   :  { %4430 = vmatmul.mubr.msk.f32.gmra.mrb[24].mxu0 %vm68_vm0, %v52_v40 }
  0x39   :  { %4432 = vmatprep.mubr.msk.f32.mxu0 %vm68_vm0, %v53_v41 }
  0x3c   :  { %4433 = vmatmul.mubr.msk.f32.gmra.mrb[26].mxu0 %vm68_vm0, %v54_v42 }
  0x3d   :  { %4435 = vmatprep.mubr.msk.f32.mxu0 %vm68_vm0, %v55_v43 }
  0x40   :  { %4436 = vmatmul.mubr.msk.f32.gmra.mrb[28].mxu0 %vm68_vm0, %v56_v44 }
  0x41   :  { %4438 = vmatprep.mubr.msk.f32.mxu0 %vm68_vm0, %v57_v45 }
  0x44   :  { %4439 = vmatmul.mubr.msk.f32.gmra.mrb[30].mxu0 %vm68_vm0, %v58_v46 }
  0xdb   :  { %v4395_v48 = vpop.f32.mrb[0].mxu0 }
  0xdc   :  { %v237_v49 = vadd.f32 %v4395_v48, %v4868_v47  ;;  %v231_v50 = vpop.f32.mrb[1].mxu0 }
  0xdd   :  { %v232_v51 = vadd.f32 %v4868_v47, %v231_v50 }
  0xde   :  { %v423_v52 = vmul.f32 0.2, %v237_v49  ;;  %vm391_vm1 = vcmp.gt.f32.partialorder %v237_v49, 0.0 }
  0xdf   :  { %vm390_vm2 = vcmp.gt.f32.partialorder %v232_v51, 0.0  ;;  %v422_v53 = vmul.f32 0.2, %v232_v51  ;;  %v4398_v54 = vpop.f32.mrb[2].mxu0 }
  0xe0   :  { %v247_v55 = vadd.f32 %v4398_v54, %v4868_v47  ;;  %v241_v56 = vpop.f32.mrb[3].mxu0  ;;  %v455_v59 = vsel %vm391_vm1, %v237_v49, %v423_v52 }
  0xe1   :  { %v242_v57 = vadd.f32 %v4868_v47, %v241_v56  ;;  %v454_v58 = vsel %vm390_vm2, %v232_v51, %v422_v53 }
  0xe2   :  { %v425_v60 = vmul.f32 0.2, %v247_v55  ;;  %4457 = vmatprep.mubr.msk.f32.mxu0 %vm501_vm3, %v454_v58  ;;  %vm393_vm4 = vcmp.gt.f32.partialorder %v247_v55, 0.0 }
  0xe3   :  { %v4401_v61 = vpop.f32.mrb[4].mxu0  ;;  %4458 = vmatmul.mubr.msk.f32.vlgmr.msra.gmra.mrb[32].mxu0 %vm501_vm3, %v455_v59  ;;  %vm392_vm5 = vcmp.gt.f32.partialorder %v242_v57, 0.0  ;;  %v424_v62 = vmul.f32 0.2, %v242_v57 }
  0xe4   :  { %v257_v63 = vadd.f32 %v4401_v61, %v4868_v47  ;;  %v251_v0 = vpop.f32.mrb[5].mxu0  ;;  %v457_v4 = vsel %vm393_vm4, %v247_v55, %v425_v60 }
  0xe5   :  { %v252_v1 = vadd.f32 %v4868_v47, %v251_v0  ;;  %v456_v2 = vsel %vm392_vm5, %v242_v57, %v424_v62 }
  0xe6   :  { %v427_v3 = vmul.f32 0.2, %v257_v63  ;;  %4460 = vmatprep.mubr.msk.f32.mxu1 %vm501_vm3, %v456_v2  ;;  %vm395_vm6 = vcmp.gt.f32.partialorder %v257_v63, 0.0 }
  0xe7   :  { %vm394_vm7 = vcmp.gt.f32.partialorder %v252_v1, 0.0  ;;  %v426_v5 = vmul.f32 0.2, %v252_v1  ;;  %v4404_v6 = vpop.f32.mrb[6].mxu0  ;;  %4461 = vmatmul.mubr.msk.f32.vlgmr.msra.gmra.mrb[0].mxu1 %vm501_vm3, %v457_v4 }
  0xe8   :  { %v267_v7 = vadd.f32 %v4404_v6, %v4868_v47  ;;  %v261_v8 = vpop.f32.mrb[7].mxu0  ;;  %v459_v12 = vsel %vm395_vm6, %v257_v63, %v427_v3 }
  0xe9   :  { %v262_v9 = vadd.f32 %v4868_v47, %v261_v8  ;;  %v458_v10 = vsel %vm394_vm7, %v252_v1, %v426_v5 }
  0xea   :  { %v429_v11 = vmul.f32 0.2, %v267_v7  ;;  %4463 = vmatprep.mubr.msk.f32.mxu1 %vm501_vm3, %v458_v10  ;;  %vm397_vm8 = vcmp.gt.f32.partialorder %v267_v7, 0.0 }
  0xeb   :  { %vm396_vm9 = vcmp.gt.f32.partialorder %v262_v9, 0.0  ;;  %v428_v13 = vmul.f32 0.2, %v262_v9  ;;  %v4407_v14 = vpop.f32.mrb[8].mxu0  ;;  %4464 = vmatmul.mubr.msk.f32.gmra.mrb[2].mxu1 %vm501_vm3, %v459_v12 }
  0xec   :  { %v277_v15 = vadd.f32 %v4407_v14, %v4868_v47  ;;  %v271_v16 = vpop.f32.mrb[9].mxu0  ;;  %v461_v20 = vsel %vm397_vm8, %v267_v7, %v429_v11 }
  0xed   :  { %v272_v17 = vadd.f32 %v4868_v47, %v271_v16  ;;  %v460_v18 = vsel %vm396_vm9, %v262_v9, %v428_v13 }
  0xee   :  { %v431_v19 = vmul.f32 0.2, %v277_v15  ;;  %4466 = vmatprep.mubr.msk.f32.mxu1 %vm501_vm3, %v460_v18  ;;  %vm399_vm10 = vcmp.gt.f32.partialorder %v277_v15, 0.0 }
  0xef   :  { %vm398_vm11 = vcmp.gt.f32.partialorder %v272_v17, 0.0  ;;  %v430_v21 = vmul.f32 0.2, %v272_v17  ;;  %v4410_v22 = vpop.f32.mrb[10].mxu0  ;;  %4467 = vmatmul.mubr.msk.f32.gmra.mrb[4].mxu1 %vm501_vm3, %v461_v20 }
  0xf0   :  { %v287_v23 = vadd.f32 %v4410_v22, %v4868_v47  ;;  %v281_v24 = vpop.f32.mrb[11].mxu0  ;;  %v463_v28 = vsel %vm399_vm10, %v277_v15, %v431_v19 }
  0xf1   :  { %v282_v25 = vadd.f32 %v4868_v47, %v281_v24  ;;  %v462_v26 = vsel %vm398_vm11, %v272_v17, %v430_v21 }
  0xf2   :  { %v433_v27 = vmul.f32 0.2, %v287_v23  ;;  %4469 = vmatprep.mubr.msk.f32.mxu1 %vm501_vm3, %v462_v26  ;;  %vm401_vm12 = vcmp.gt.f32.partialorder %v287_v23, 0.0 }
  0xf3   :  { %vm400_vm13 = vcmp.gt.f32.partialorder %v282_v25, 0.0  ;;  %v432_v29 = vmul.f32 0.2, %v282_v25  ;;  %v4413_v30 = vpop.f32.mrb[12].mxu0  ;;  %4470 = vmatmul.mubr.msk.f32.gmra.mrb[6].mxu1 %vm501_vm3, %v463_v28 }
  0xf4   :  { %v297_v31 = vadd.f32 %v4413_v30, %v4868_v47  ;;  %v291_v32 = vpop.f32.mrb[13].mxu0  ;;  %v465_v36 = vsel %vm401_vm12, %v287_v23, %v433_v27 }
  0xf5   :  { %v292_v33 = vadd.f32 %v4868_v47, %v291_v32  ;;  %v464_v34 = vsel %vm400_vm13, %v282_v25, %v432_v29 }
  0xf6   :  { %v435_v35 = vmul.f32 0.2, %v297_v31  ;;  %4472 = vmatprep.mubr.msk.f32.mxu1 %vm501_vm3, %v464_v34  ;;  %vm403_vm14 = vcmp.gt.f32.partialorder %v297_v31, 0.0 }
  0xf7   :  { %vm402_vm15 = vcmp.gt.f32.partialorder %v292_v33, 0.0  ;;  %v434_v37 = vmul.f32 0.2, %v292_v33  ;;  %v4416_v38 = vpop.f32.mrb[14].mxu0  ;;  %4473 = vmatmul.mubr.msk.f32.gmra.mrb[8].mxu1 %vm501_vm3, %v465_v36 }
  0xf8   :  { %v307_v39 = vadd.f32 %v4416_v38, %v4868_v47  ;;  %v301_v40 = vpop.f32.mrb[15].mxu0  ;;  %v467_v44 = vsel %vm403_vm14, %v297_v31, %v435_v35 }
  0xf9   :  { %v302_v41 = vadd.f32 %v4868_v47, %v301_v40  ;;  %v466_v42 = vsel %vm402_vm15, %v292_v33, %v434_v37 }
  0xfa   :  { %v437_v43 = vmul.f32 0.2, %v307_v39  ;;  %4475 = vmatprep.mubr.msk.f32.mxu1 %vm501_vm3, %v466_v42  ;;  %vm405_vm0 = vcmp.gt.f32.partialorder %v307_v39, 0.0 }
  0xfb   :  { %vm404_vm1 = vcmp.gt.f32.partialorder %v302_v41, 0.0  ;;  %v436_v45 = vmul.f32 0.2, %v302_v41  ;;  %v4419_v46 = vpop.f32.mrb[16].mxu0  ;;  %4476 = vmatmul.mubr.msk.f32.gmra.mrb[10].mxu1 %vm501_vm3, %v467_v44 }
  0xfc   :  { %v317_v48 = vadd.f32 %v4419_v46, %v4868_v47  ;;  %v311_v49 = vpop.f32.mrb[17].mxu0  ;;  %v469_v53 = vsel %vm405_vm0, %v307_v39, %v437_v43 }
  0xfd   :  { %v312_v50 = vadd.f32 %v4868_v47, %v311_v49  ;;  %v468_v51 = vsel %vm404_vm1, %v302_v41, %v436_v45 }
  0xfe   :  { %v439_v52 = vmul.f32 0.2, %v317_v48  ;;  %4478 = vmatprep.mubr.msk.f32.mxu1 %vm501_vm3, %v468_v51  ;;  %vm407_vm2 = vcmp.gt.f32.partialorder %v317_v48, 0.0 }
  0xff   :  { %vm406_vm4 = vcmp.gt.f32.partialorder %v312_v50, 0.0  ;;  %v438_v54 = vmul.f32 0.2, %v312_v50  ;;  %v4422_v55 = vpop.f32.mrb[18].mxu0  ;;  %4479 = vmatmul.mubr.msk.f32.gmra.mrb[12].mxu1 %vm501_vm3, %v469_v53 }
 0x100   :  { %v327_v56 = vadd.f32 %v4422_v55, %v4868_v47  ;;  %v321_v57 = vpop.f32.mrb[19].mxu0  ;;  %v471_v61 = vsel %vm407_vm2, %v317_v48, %v439_v52  ;;  %v4944_v55 = vld [vmem:[%s5976_s5] ss:$0 sm:$0xff] }
 0x101   :  { %v322_v58 = vadd.f32 %v4868_v47, %v321_v57  ;;  %v470_v59 = vsel %vm406_vm4, %v312_v50, %v438_v54  ;;  %v4937_v50 = vld [vmem:[%s5975_s4] ss:$0 sm:$0xff] }
 0x102   :  { %v441_v60 = vmul.f32 0.2, %v327_v56  ;;  %4481 = vmatprep.mubr.msk.f32.mxu1 %vm501_vm3, %v470_v59  ;;  %vm409_vm5 = vcmp.gt.f32.partialorder %v327_v56, 0.0 }
 0x103   :  { %vm408_vm6 = vcmp.gt.f32.partialorder %v322_v58, 0.0  ;;  %v440_v62 = vmul.f32 0.2, %v322_v58  ;;  %v4425_v63 = vpop.f32.mrb[20].mxu0  ;;  %4482 = vmatmul.mubr.msk.f32.gmra.mrb[14].mxu1 %vm501_vm3, %v471_v61 }
 0x104   :  { %v337_v0 = vadd.f32 %v4425_v63, %v4868_v47  ;;  %v331_v1 = vpop.f32.mrb[21].mxu0  ;;  %v473_v5 = vsel %vm409_vm5, %v327_v56, %v441_v60 }
 0x105   :  { %v332_v2 = vadd.f32 %v4868_v47, %v331_v1  ;;  %v472_v3 = vsel %vm408_vm6, %v322_v58, %v440_v62 }
 0x106   :  { %v443_v4 = vmul.f32 0.2, %v337_v0  ;;  %4484 = vmatprep.mubr.msk.f32.mxu1 %vm501_vm3, %v472_v3  ;;  %vm411_vm7 = vcmp.gt.f32.partialorder %v337_v0, 0.0 }
 0x107   :  { %vm410_vm8 = vcmp.gt.f32.partialorder %v332_v2, 0.0  ;;  %v442_v6 = vmul.f32 0.2, %v332_v2  ;;  %v4428_v7 = vpop.f32.mrb[22].mxu0  ;;  %4485 = vmatmul.mubr.msk.f32.gmra.mrb[16].mxu1 %vm501_vm3, %v473_v5 }
 0x108   :  { %v347_v8 = vadd.f32 %v4428_v7, %v4868_v47  ;;  %v341_v9 = vpop.f32.mrb[23].mxu0  ;;  %v475_v13 = vsel %vm411_vm7, %v337_v0, %v443_v4 }
 0x109   :  { %v342_v10 = vadd.f32 %v4868_v47, %v341_v9  ;;  %v474_v11 = vsel %vm410_vm8, %v332_v2, %v442_v6 }
 0x10a   :  { %vm413_vm9 = vcmp.gt.f32.partialorder %v347_v8, 0.0  ;;  %v445_v12 = vmul.f32 0.2, %v347_v8  ;;  %4487 = vmatprep.mubr.msk.f32.mxu1 %vm501_vm3, %v474_v11 }
 0x10b   :  { %vm412_vm10 = vcmp.gt.f32.partialorder %v342_v10, 0.0  ;;  %v444_v14 = vmul.f32 0.2, %v342_v10  ;;  %4488 = vmatmul.mubr.msk.f32.gmra.mrb[18].mxu1 %vm501_vm3, %v475_v13  ;;  %v4431_v15 = vpop.f32.mrb[24].mxu0 }
 0x10c   :  { %v357_v16 = vadd.f32 %v4431_v15, %v4868_v47  ;;  %v351_v17 = vpop.f32.mrb[25].mxu0  ;;  %v477_v18 = vsel %vm413_vm9, %v347_v8, %v445_v12 }
 0x10d   :  { %v352_v19 = vadd.f32 %v4868_v47, %v351_v17  ;;  %v476_v20 = vsel %vm412_vm10, %v342_v10, %v444_v14 }
 0x10e   :  { %vm415_vm11 = vcmp.gt.f32.partialorder %v357_v16, 0.0  ;;  %v447_v21 = vmul.f32 0.2, %v357_v16  ;;  %4490 = vmatprep.mubr.msk.f32.mxu1 %vm501_vm3, %v476_v20 }
 0x10f   :  { %vm414_vm12 = vcmp.gt.f32.partialorder %v352_v19, 0.0  ;;  %v446_v22 = vmul.f32 0.2, %v352_v19  ;;  %4491 = vmatmul.mubr.msk.f32.gmra.mrb[20].mxu1 %vm501_vm3, %v477_v18  ;;  %v4434_v23 = vpop.f32.mrb[26].mxu0 }
 0x110   :  { %v367_v24 = vadd.f32 %v4434_v23, %v4868_v47  ;;  %v479_v25 = vsel %vm415_vm11, %v357_v16, %v447_v21  ;;  %v361_v26 = vpop.f32.mrb[27].mxu0 }
 0x111   :  { %v478_v27 = vsel %vm414_vm12, %v352_v19, %v446_v22  ;;  %v362_v28 = vadd.f32 %v4868_v47, %v361_v26 }
 0x112   :  { %4493 = vmatprep.mubr.msk.f32.mxu1 %vm501_vm3, %v478_v27  ;;  %vm417_vm13 = vcmp.gt.f32.partialorder %v367_v24, 0.0  ;;  %v449_v29 = vmul.f32 0.2, %v367_v24 }
 0x113   :  { %4494 = vmatmul.mubr.msk.f32.gmra.mrb[22].mxu1 %vm501_vm3, %v479_v25  ;;  %vm416_vm14 = vcmp.gt.f32.partialorder %v362_v28, 0.0  ;;  %v448_v30 = vmul.f32 0.2, %v362_v28  ;;  %v4437_v31 = vpop.f32.mrb[28].mxu0 }
 0x114   :  { %v377_v32 = vadd.f32 %v4437_v31, %v4868_v47  ;;  %v481_v33 = vsel %vm417_vm13, %v367_v24, %v449_v29  ;;  %v371_v34 = vpop.f32.mrb[29].mxu0 }
 0x115   :  { %v480_v35 = vsel %vm416_vm14, %v362_v28, %v448_v30  ;;  %v372_v36 = vadd.f32 %v4868_v47, %v371_v34 }
 0x116   :  { %4496 = vmatprep.mubr.msk.f32.mxu1 %vm501_vm3, %v480_v35  ;;  %vm419_vm15 = vcmp.gt.f32.partialorder %v377_v32, 0.0  ;;  %v451_v37 = vmul.f32 0.2, %v377_v32 }
 0x117   :  { %4497 = vmatmul.mubr.msk.f32.gmra.mrb[24].mxu1 %vm501_vm3, %v481_v33  ;;  %vm418_vm0 = vcmp.gt.f32.partialorder %v372_v36, 0.0  ;;  %v450_v38 = vmul.f32 0.2, %v372_v36  ;;  %v4440_v39 = vpop.f32.mrb[30].mxu0 }
 0x118   :  { %v387_v40 = vadd.f32 %v4440_v39, %v4868_v47  ;;  %v381_v41 = vpop.f32.mrb[31].mxu0  ;;  %v483_v42 = vsel %vm419_vm15, %v377_v32, %v451_v37 }
 0x119   :  { %v482_v43 = vsel %vm418_vm0, %v372_v36, %v450_v38  ;;  %v382_v44 = vadd.f32 %v4868_v47, %v381_v41 }
 0x11a   :  { %vm421_vm1 = vcmp.gt.f32.partialorder %v387_v40, 0.0  ;;  %v453_v45 = vmul.f32 0.2, %v387_v40  ;;  %4499 = vmatprep.mubr.msk.f32.mxu1 %vm501_vm3, %v482_v43 }
 0x11b   :  { %vm420_vm2 = vcmp.gt.f32.partialorder %v382_v44, 0.0  ;;  %v452_v46 = vmul.f32 0.2, %v382_v44  ;;  %4500 = vmatmul.mubr.msk.f32.gmra.mrb[26].mxu1 %vm501_vm3, %v483_v42 }
 0x11c   :  { %v485_v48 = vsel %vm421_vm1, %v387_v40, %v453_v45 }
 0x11d   :  { %v484_v49 = vsel %vm420_vm2, %v382_v44, %v452_v46 }
 0x11e   :  { %4502 = vmatprep.mubr.msk.f32.mxu1 %vm501_vm3, %v484_v49 }
 0x11f   :  { %4503 = vmatmul.mubr.msk.f32.gmra.mrb[28].mxu1 %vm501_vm3, %v485_v48  ;;  %vm958_vm3 = vcmask 261120  }
 0x1b6   :  { %v4459_v47 = vpop.f32.mrb[32].mxu0 }
 0x1b7   :  { %v670_v51 = vadd.f32 %v4459_v47, %v4937_v50  ;;  %v664_v52 = vpop.f32.mrb[33].mxu0 }
 0x1b8   :  { %v665_v53 = vadd.f32 %v4937_v50, %v664_v52 }
 0x1b9   :  { %v856_v54 = vmul.f32 0.2, %v670_v51  ;;  %vm824_vm4 = vcmp.gt.f32.partialorder %v670_v51, 0.0 }
 0x1ba   :  { %vm823_vm5 = vcmp.gt.f32.partialorder %v665_v53, 0.0  ;;  %v855_v56 = vmul.f32 0.2, %v665_v53  ;;  %v4462_v57 = vpop.f32.mrb[0].mxu1 }
 0x1bb   :  { %v680_v58 = vadd.f32 %v4462_v57, %v4937_v50  ;;  %v674_v59 = vpop.f32.mrb[1].mxu1  ;;  %v888_v60 = vsel %vm824_vm4, %v670_v51, %v856_v54 }
 0x1bc   :  { %v675_v61 = vadd.f32 %v4937_v50, %v674_v59  ;;  %v927_v62 = vmul.f32 %v4944_v55, %v888_v60  ;;  %v887_v63 = vsel %vm823_vm5, %v665_v53, %v855_v56 }
 0x1bd   :  { %v858_v0 = vmul.f32 0.2, %v680_v58  ;;  %vm826_vm6 = vcmp.gt.f32.partialorder %v680_v58, 0.0  ;;  %v926_v1 = vmul.f32 %v4944_v55, %v887_v63 }
 0x1be   :  { %vm825_vm7 = vcmp.gt.f32.partialorder %v675_v61, 0.0  ;;  %v857_v2 = vmul.f32 0.2, %v675_v61  ;;  %v4465_v3 = vpop.f32.mrb[2].mxu1  ;;  %v962_v4 = vsel %vm958_vm3, %v927_v62, 0.0 }
 0x1bf   :  { %v690_v5 = vadd.f32 %v4465_v3, %v4937_v50  ;;  %v684_v6 = vpop.f32.mrb[3].mxu1  ;;  %963 = vadd.xlane.f32.xlu0 %v962_v4  ;;  %v890_v7 = vsel %vm826_vm6, %v680_v58, %v858_v0  ;;  %v959_v12 = vsel %vm958_vm3, %v926_v1, 0.0 }
 0x1c0   :  { %v685_v8 = vadd.f32 %v4937_v50, %v684_v6  ;;  %v929_v9 = vmul.f32 %v4944_v55, %v890_v7  ;;  %v889_v10 = vsel %vm825_vm7, %v675_v61, %v857_v2 }
 0x1c1   :  { %vm828_vm8 = vcmp.gt.f32.partialorder %v690_v5, 0.0  ;;  %v860_v11 = vmul.f32 0.2, %v690_v5  ;;  %v928_v16 = vmul.f32 %v4944_v55, %v889_v10 }
 0x1c2   :  { %vm827_vm9 = vcmp.gt.f32.partialorder %v685_v8, 0.0  ;;  %v859_v13 = vmul.f32 0.2, %v685_v8  ;;  %v4468_v14 = vpop.f32.mrb[4].mxu1  ;;  %v968_v15 = vsel %vm958_vm3, %v929_v9, 0.0 }
 0x1c3   :  { %v700_v17 = vadd.f32 %v4468_v14, %v4937_v50  ;;  %969 = vadd.xlane.f32.xlu1 %v968_v15  ;;  %v694_v18 = vpop.f32.mrb[5].mxu1  ;;  %960 = vadd.xlane.f32.xlu0 %v959_v12  ;;  %v892_v19 = vsel %vm828_vm8, %v690_v5, %v860_v11  ;;  %v965_v25 = vsel %vm958_vm3, %v928_v16, 0.0 }
 0x1c4   :  { %v695_v20 = vadd.f32 %v4937_v50, %v694_v18  ;;  %v931_v21 = vmul.f32 %v4944_v55, %v892_v19  ;;  %v891_v22 = vsel %vm827_vm9, %v685_v8, %v859_v13 }
 0x1c5   :  { %vm830_vm10 = vcmp.gt.f32.partialorder %v700_v17, 0.0  ;;  %v862_v23 = vmul.f32 0.2, %v700_v17  ;;  %v930_v27 = vmul.f32 %v4944_v55, %v891_v22 }
 0x1c6   :  { %v4471_v24 = vpop.f32.mrb[6].mxu1  ;;  %v974_v26 = vsel %vm958_vm3, %v931_v21, 0.0  ;;  %v861_v28 = vmul.f32 0.2, %v695_v20  ;;  %vm829_vm11 = vcmp.gt.f32.partialorder %v695_v20, 0.0 }
 0x1c7   :  { %v710_v29 = vadd.f32 %v4471_v24, %v4937_v50  ;;  %v704_v30 = vpop.f32.mrb[7].mxu1  ;;  %966 = vadd.xlane.f32.xlu1 %v965_v25  ;;  %975 = vadd.xlane.f32.xlu0 %v974_v26  ;;  %v894_v31 = vsel %vm830_vm10, %v700_v17, %v862_v23  ;;  %v971_v34 = vsel %vm958_vm3, %v930_v27, 0.0 }
 0x1c8   :  { %v705_v32 = vadd.f32 %v4937_v50, %v704_v30  ;;  %v933_v35 = vmul.f32 %v4944_v55, %v894_v31  ;;  %v893_v38 = vsel %vm829_vm11, %v695_v20, %v861_v28 }
 0x1c9   :  { %v864_v36 = vmul.f32 0.2, %v710_v29  ;;  %vm832_vm12 = vcmp.gt.f32.partialorder %v710_v29, 0.0  ;;  %v932_v43 = vmul.f32 %v4944_v55, %v893_v38 }
 0x1ca   :  { %v4474_v33 = vpop.f32.mrb[8].mxu1  ;;  %v863_v39 = vmul.f32 0.2, %v705_v32  ;;  %v980_v42 = vsel %vm958_vm3, %v933_v35, 0.0  ;;  %vm831_vm13 = vcmp.gt.f32.partialorder %v705_v32, 0.0 }
 0x1cb   :  { %v714_v37 = vpop.f32.mrb[9].mxu1  ;;  %972 = vadd.xlane.f32.xlu0 %v971_v34  ;;  %v720_v40 = vadd.f32 %v4474_v33, %v4937_v50  ;;  %v896_v45 = vsel %vm832_vm12, %v710_v29, %v864_v36  ;;  %v977_v47 = vsel %vm958_vm3, %v932_v43, 0.0 }
 0x1cc   :  { %v715_v46 = vadd.f32 %v4937_v50, %v714_v37  ;;  %v935_v51 = vmul.f32 %v4944_v55, %v896_v45  ;;  %v895_v52 = vsel %vm831_vm13, %v705_v32, %v863_v39 }
 0x1cd   :  { %v866_v48 = vmul.f32 0.2, %v720_v40  ;;  %vm834_vm14 = vcmp.gt.f32.partialorder %v720_v40, 0.0  ;;  %v934_v57 = vmul.f32 %v4944_v55, %v895_v52 }
 0x1ce   :  { %v4477_v41 = vpop.f32.mrb[10].mxu1  ;;  %v865_v54 = vmul.f32 0.2, %v715_v46  ;;  %vm833_vm15 = vcmp.gt.f32.partialorder %v715_v46, 0.0  ;;  %v986_v59 = vsel %vm958_vm3, %v935_v51, 0.0 }
 0x1cf   :  { %v724_v44 = vpop.f32.mrb[11].mxu1  ;;  %981 = vadd.xlane.f32.xlu0 %v980_v42  ;;  %v898_v60 = vsel %vm834_vm14, %v720_v40, %v866_v48  ;;  %v730_v62 = vadd.f32 %v4477_v41, %v4937_v50  ;;  %v983_v1 = vsel %vm958_vm3, %v934_v57, 0.0 }
 0x1d0   :  { %v725_v56 = vadd.f32 %v4937_v50, %v724_v44  ;;  %v937_v2 = vmul.f32 %v4944_v55, %v898_v60  ;;  %v897_v3 = vsel %vm833_vm15, %v715_v46, %v865_v54 }
 0x1d1   :  { %vm836_vm2 = vcmp.gt.f32.partialorder %v730_v62, 0.0  ;;  %v936_v10 = vmul.f32 %v4944_v55, %v897_v3  ;;  %v868_v11 = vmul.f32 0.2, %v730_v62 }
 0x1d2   :  { %v4480_v49 = vpop.f32.mrb[12].mxu1  ;;  %v867_v0 = vmul.f32 0.2, %v725_v56  ;;  %vm835_vm0 = vcmp.gt.f32.partialorder %v725_v56, 0.0  ;;  %v992_v12 = vsel %vm958_vm3, %v937_v2, 0.0 }
 0x1d3   :  { %v734_v53 = vpop.f32.mrb[13].mxu1  ;;  %978 = vadd.xlane.f32.xlu0 %v977_v47  ;;  %v4987_v19 = vadd.f32 %v4480_v49, %v4937_v50  ;;  %v989_v25 = vsel %vm958_vm3, %v936_v10, 0.0  ;;  %v900_v41 = vsel %vm836_vm2, %v730_v62, %v868_v11 }
 0x1d4   :  { %v899_v14 = vsel %vm835_vm0, %v725_v56, %v867_v0  ;;  %v735_v23 = vadd.f32 %v4937_v50, %v734_v53  ;;  %v939_v57 = vmul.f32 %v4944_v55, %v900_v41  ;;  %v4665_v41 = vmov 0  }
 0x1d5   :  { %v938_v29 = vmul.f32 %v4944_v55, %v899_v14  ;;  %v870_v54 = vmul.f32 0.2, %v4987_v19  ;;  %vm838_vm12 = vcmp.gt.f32.partialorder %v4987_v19, 0.0  ;;  %4535 = vset.pattern.permute.xlu1 %v4665_v41  ;;  %4536 = vset.pattern.permute.xlu0 %v4665_v41 }
 0x1d6   :  { %v4483_v58 = vpop.f32.mrb[14].mxu1  ;;  %v869_v42 = vmul.f32 0.2, %v735_v23  ;;  %vm837_vm10 = vcmp.gt.f32.partialorder %v735_v23, 0.0 }
 0x1d7   :  { %v744_v61 = vpop.f32.mrb[15].mxu1  ;;  %987 = vadd.xlane.f32.xlu0 %v986_v59  ;;  %v750_v4 = vadd.f32 %v4483_v58, %v4937_v50  ;;  %v995_v44 = vsel %vm958_vm3, %v938_v29, 0.0 }
 0x1d8   :  { %v745_v63 = vadd.f32 %v4937_v50, %v744_v61 }
 0x1d9   :  { %v872_v15 = vmul.f32 0.2, %v750_v4  ;;  %vm840_vm5 = vcmp.gt.f32.partialorder %v750_v4, 0.0 }
 0x1da   :  { %vm839_vm1 = vcmp.gt.f32.partialorder %v745_v63, 0.0  ;;  %v871_v5 = vmul.f32 0.2, %v745_v63  ;;  %v4486_v6 = vpop.f32.mrb[16].mxu1 }
 0x1db   :  { %v754_v7 = vpop.f32.mrb[17].mxu1  ;;  %984 = vadd.xlane.f32.xlu0 %v983_v1  ;;  %v760_v16 = vadd.f32 %v4486_v6, %v4937_v50  ;;  %v904_v33 = vsel %vm840_vm5, %v750_v4, %v872_v15  ;;  %v998_v6 = vsel %vm958_vm3, %v939_v57, 0.0 }
 0x1dc   :  { %v755_v8 = vadd.f32 %v4937_v50, %v754_v7  ;;  %v903_v9 = vsel %vm839_vm1, %v745_v63, %v871_v5  ;;  %v943_v49 = vmul.f32 %v4944_v55, %v904_v33  ;;  %v901_v63 = vsel %vm837_vm10, %v735_v23, %v869_v42 }
 0x1dd   :  { %v942_v13 = vmul.f32 %v4944_v55, %v903_v9  ;;  %v874_v30 = vmul.f32 0.2, %v760_v16  ;;  %vm842_vm8 = vcmp.gt.f32.partialorder %v760_v16, 0.0  ;;  %v902_v7 = vsel %vm838_vm12, %v4987_v19, %v870_v54 }
 0x1de   :  { %vm841_vm4 = vcmp.gt.f32.partialorder %v755_v8, 0.0  ;;  %v873_v17 = vmul.f32 0.2, %v755_v8  ;;  %v4489_v18 = vpop.f32.mrb[18].mxu1  ;;  %v1010_v60 = vsel %vm958_vm3, %v943_v49, 0.0  ;;  %vm4047_vm10 = vcmask 458112  }
 0x1df   :  { %v770_v20 = vadd.f32 %v4489_v18, %v4937_v50  ;;  %v764_v21 = vpop.f32.mrb[19].mxu1  ;;  %993 = vadd.xlane.f32.xlu0 %v992_v12  ;;  %v1007_v22 = vsel %vm958_vm3, %v942_v13, 0.0  ;;  %v906_v47 = vsel %vm842_vm8, %v760_v16, %v874_v30  ;;  %v940_v13 = vmul.f32 %v4944_v55, %v901_v63 }
 0x1e0   :  { %v765_v24 = vadd.f32 %v4937_v50, %v764_v21  ;;  %1008 = vadd.xlane.f32.xlu1 %v1007_v22  ;;  %v905_v26 = vsel %vm841_vm4, %v755_v8, %v873_v17  ;;  %v945_v58 = vmul.f32 %v4944_v55, %v906_v47  ;;  %vm4033_vm8 = vcmask 326912  }
 0x1e1   :  { %vm844_vm6 = vcmp.gt.f32.partialorder %v770_v20, 0.0  ;;  %v876_v27 = vmul.f32 0.2, %v770_v20  ;;  %v944_v28 = vmul.f32 %v4944_v55, %v905_v26  ;;  %v1001_v42 = vsel %vm958_vm3, %v940_v13, 0.0 }
 0x1e2   :  { %vm843_vm7 = vcmp.gt.f32.partialorder %v765_v24, 0.0  ;;  %v875_v31 = vmul.f32 0.2, %v765_v24  ;;  %v4492_v32 = vpop.f32.mrb[20].mxu1  ;;  %v1016_v8 = vsel %vm958_vm3, %v945_v58, 0.0  ;;  %vm4061_vm12 = vcmask 589312  }
 0x1e3   :  { %v780_v34 = vadd.f32 %v4492_v32, %v4937_v50  ;;  %v774_v35 = vpop.f32.mrb[21].mxu1  ;;  %990 = vadd.xlane.f32.xlu0 %v989_v25  ;;  %v1013_v36 = vsel %vm958_vm3, %v944_v28, 0.0  ;;  %v908_v37 = vsel %vm844_vm6, %v770_v20, %v876_v27  ;;  %vm4019_vm6 = vcmask 195712  }
 0x1e4   :  { %v775_v38 = vadd.f32 %v4937_v50, %v774_v35  ;;  %1014 = vadd.xlane.f32.xlu1 %v1013_v36  ;;  %v947_v39 = vmul.f32 %v4944_v55, %v908_v37  ;;  %v907_v40 = vsel %vm843_vm7, %v765_v24, %v875_v31  ;;  %vm4026_vm7 = vcmask 261312  }
 0x1e5   :  { %vm846_vm9 = vcmp.gt.f32.partialorder %v780_v34, 0.0  ;;  %v878_v43 = vmul.f32 0.2, %v780_v34  ;;  %v946_v53 = vmul.f32 %v4944_v55, %v907_v40 }
 0x1e6   :  { %v877_v45 = vmul.f32 0.2, %v775_v38  ;;  %v4495_v46 = vpop.f32.mrb[22].mxu1  ;;  %v1022_v48 = vsel %vm958_vm3, %v947_v39, 0.0  ;;  %vm845_vm11 = vcmp.gt.f32.partialorder %v775_v38, 0.0 }
 0x1e7   :  { %996 = vadd.xlane.f32.xlu0 %v995_v44  ;;  %v790_v51 = vadd.f32 %v4495_v46, %v4937_v50  ;;  %v784_v52 = vpop.f32.mrb[23].mxu1  ;;  %v910_v56 = vsel %vm846_vm9, %v780_v34, %v878_v43  ;;  %v1019_v1 = vsel %vm958_vm3, %v946_v53, 0.0  ;;  %vm4040_vm9 = vcmask 392512  }
 0x1e8   :  { %1023 = vadd.xlane.f32.xlu1 %v1022_v48  ;;  %v785_v59 = vadd.f32 %v4937_v50, %v784_v52  ;;  %v909_v62 = vsel %vm845_vm11, %v775_v38, %v877_v45  ;;  %v949_v3 = vmul.f32 %v4944_v55, %v910_v56  ;;  %v941_v38 = vmul.f32 %v4944_v55, %v902_v7 }
 0x1e9   :  { %v880_v0 = vmul.f32 0.2, %v790_v51  ;;  %vm848_vm13 = vcmp.gt.f32.partialorder %v790_v51, 0.0  ;;  %v948_v10 = vmul.f32 %v4944_v55, %v909_v62  ;;  %vm4054_vm11 = vcmask 523712  }
 0x1ea   :  { %v4498_v61 = vpop.f32.mrb[24].mxu1  ;;  %v879_v11 = vmul.f32 0.2, %v785_v59  ;;  %v1028_v15 = vsel %vm958_vm3, %v949_v3, 0.0  ;;  %vm847_vm0 = vcmp.gt.f32.partialorder %v785_v59, 0.0  ;;  %v1004_v52 = vsel %vm958_vm3, %v941_v38, 0.0 }
 0x1eb   :  { %1011 = vadd.xlane.f32.xlu0 %v1010_v60  ;;  %v800_v2 = vadd.f32 %v4498_v61, %v4937_v50  ;;  %v794_v4 = vpop.f32.mrb[25].mxu1  ;;  %v912_v17 = vsel %vm848_vm13, %v790_v51, %v880_v0  ;;  %v1025_v23 = vsel %vm958_vm3, %v948_v10, 0.0  ;;  %vm4068_vm13 = vcmask 654912  }
 0x1ec   :  { %1020 = vadd.xlane.f32.xlu1 %v1019_v1  ;;  %v795_v5 = vadd.f32 %v4937_v50, %v794_v4  ;;  %v951_v26 = vmul.f32 %v4944_v55, %v912_v17  ;;  %v911_v30 = vsel %vm847_vm0, %v785_v59, %v879_v11  ;;  %vm4089_vm0 = vcmask 851712  }
 0x1ed   :  { %vm850_vm14 = vcmp.gt.f32.partialorder %v800_v2, 0.0  ;;  %v882_v9 = vmul.f32 0.2, %v800_v2  ;;  %v950_v45 = vmul.f32 %v4944_v55, %v911_v30 }
 0x1ee   :  { %vm849_vm15 = vcmp.gt.f32.partialorder %v795_v5, 0.0  ;;  %v881_v12 = vmul.f32 0.2, %v795_v5  ;;  %v4501_v14 = vpop.f32.mrb[26].mxu1 }
 0x1ef   :  { %1017 = vadd.xlane.f32.xlu0 %v1016_v8  ;;  %v810_v16 = vadd.f32 %v4501_v14, %v4937_v50  ;;  %v804_v18 = vpop.f32.mrb[27].mxu1  ;;  %v914_v19 = vsel %vm850_vm14, %v800_v2, %v882_v9  ;;  %v1031_v54 = vsel %vm958_vm3, %v950_v45, 0.0  ;;  %v1313_v14 = vlaneseq }
 0x1f0   :  { %1029 = vadd.xlane.f32.xlu1 %v1028_v15  ;;  %v805_v20 = vadd.f32 %v4937_v50, %v804_v18  ;;  %v953_v21 = vmul.f32 %v4944_v55, %v914_v19  ;;  %v913_v22 = vsel %vm849_vm15, %v795_v5, %v881_v12  ;;  %vm4075_vm14 = vcmask 720512  }
 0x1f1   :  { %vm852_vm1 = vcmp.gt.f32.partialorder %v810_v16, 0.0  ;;  %v884_v24 = vmul.f32 0.2, %v810_v16  ;;  %v952_v25 = vmul.f32 %v4944_v55, %v913_v22  ;;  %v4666_v22 = vmov 1966171168  }
 0x1f2   :  { %vm851_vm2 = vcmp.gt.f32.partialorder %v805_v20, 0.0  ;;  %v883_v27 = vmul.f32 0.2, %v805_v20  ;;  %v4504_v28 = vpop.f32.mrb[28].mxu1  ;;  %v1040_v29 = vsel %vm958_vm3, %v953_v21, 0.0  ;;  %v5066_v21 = vshrl.u32 %v1313_v14, 7 }
 0x1f3   :  { %999 = vadd.xlane.f32.xlu0 %v998_v6  ;;  %v820_v31 = vadd.f32 %v4504_v28, %v4937_v50  ;;  %v814_v32 = vpop.f32.mrb[29].mxu1  ;;  %v1037_v33 = vsel %vm958_vm3, %v952_v25, 0.0  ;;  %v916_v34 = vsel %vm852_vm1, %v810_v16, %v884_v24  ;;  %vm4082_vm15 = vcmask 786112  }
 0x1f4   :  { %1026 = vadd.xlane.f32.xlu1 %v1025_v23  ;;  %v815_v35 = vadd.f32 %v4937_v50, %v814_v32  ;;  %v955_v36 = vmul.f32 %v4944_v55, %v916_v34  ;;  %v915_v37 = vsel %vm851_vm2, %v805_v20, %v883_v27  ;;  %v1034_v50 = vsel %vm958_vm3, %v951_v26, 0.0 }
 0x1f5   :  { %vm854_vm4 = vcmp.gt.f32.partialorder %v820_v31, 0.0  ;;  %v886_v39 = vmul.f32 0.2, %v820_v31  ;;  %v954_v40 = vmul.f32 %v4944_v55, %v915_v37  ;;  %v2342_v23 = vunpack.c.l.s4 %v4666_v22 }
 0x1f6   :  { %vm853_vm5 = vcmp.gt.f32.partialorder %v815_v35, 0.0  ;;  %v885_v43 = vmul.f32 0.2, %v815_v35  ;;  %v1046_v44 = vsel %vm958_vm3, %v955_v36, 0.0  ;;  %v5074_v34 = vsub.s32 1, %v5066_v21 }
 0x1f7   :  { %1002 = vadd.xlane.f32.xlu0 %v1001_v42  ;;  %v1043_v46 = vsel %vm958_vm3, %v954_v40, 0.0  ;;  %v918_v48 = vsel %vm854_vm4, %v820_v31, %v886_v39  ;;  %v5070_v31 = vsub.s32 0, %v5066_v21  ;;  %v2343_v32 = vunpack.c.0.s8 %v2342_v23 }
 0x1f8   :  { %1035 = vadd.xlane.f32.xlu1 %v1034_v50  ;;  %v917_v49 = vsel %vm853_vm5, %v815_v35, %v885_v43  ;;  %v957_v47 = vmul.f32 %v4944_v55, %v918_v48  ;;  %v5077_v35 = vsub.s32 2, %v5066_v21  ;;  %v5080_v37 = vsub.s32 3, %v5066_v21 }
 0x1f9   :  { %v956_v51 = vmul.f32 %v4944_v55, %v917_v49  ;;  %v5056_v55 = vstv %s5977_s6  ;;  %v5083_v38 = vsub.s32 4, %v5066_v21  ;;  %v5086_v39 = vsub.s32 5, %v5066_v21 }
 0x1fa   :  { %v1052_v53 = vsel %vm958_vm3, %v957_v47, 0.0  ;;  %v5089_v42 = vsub.s32 6, %v5066_v21  ;;  %v5092_v43 = vsub.s32 7, %v5066_v21  ;;  %vm4096_vm1 = vcmask 917312  }
 0x1fb   :  { %1005 = vadd.xlane.f32.xlu0 %v1004_v52  ;;  %v1049_v56 = vsel %vm958_vm3, %v956_v51, 0.0  ;;  %vm4012_vm3 = vcmask 130112   ;;  %vm4103_vm2 = vcmask 982912   ;;  %vm4110_vm4 = vcmask 1048512  }
 0x1fc   :  { %1032 = vadd.xlane.f32.xlu1 %v1031_v54  ;;  %vm4209_vm5 = vcmp.lt.s32.totalorder %v1313_v14, 256 }
 0x200   :  { %1041 = vadd.xlane.f32.xlu1 %v1040_v29 }
 0x204   :  { %1038 = vadd.xlane.f32.xlu1 %v1037_v33 }
 0x208   :  { %1047 = vadd.xlane.f32.xlu1 %v1046_v44 }
 0x20c   :  { %1044 = vadd.xlane.f32.xlu1 %v1043_v46  ;;  %v5095_v46 = vsub.s32 %v2343_v32, %v5066_v21 }
 0x210   :  { %1050 = vadd.xlane.f32.xlu1 %v1049_v56 }
 0x214   :  { %1053 = vadd.xlane.f32.xlu1 %v1052_v53 }
 0x24c   :  { %v964_v57 = vpop.xlane.xlu0 %963 }
 0x24d   :  { %v1058_v58 = vadd.f32 %v5056_v55, %v964_v57 }
 0x24f   :  { %v4284_v59 = vmul.f32 -1.442695, %v1058_v58 }
 0x250   :  { %v970_v60 = vpop.xlane.xlu1 %969  ;;  %v961_v61 = vpop.xlane.xlu0 %960 }
 0x251   :  { %4537 = vpow2.f32 %v4284_v59  ;;  %v1060_v62 = vadd.f32 %v5056_v55, %v970_v60  ;;  %v1057_v63 = vadd.f32 %v5056_v55, %v961_v61 }
 0x253   :  { %v4286_v0 = vmul.f32 -1.442695, %v1060_v62  ;;  %v4283_v1 = vmul.f32 -1.442695, %v1057_v63 }
 0x254   :  { %v967_v2 = vpop.xlane.xlu1 %966  ;;  %v976_v3 = vpop.xlane.xlu0 %975 }
 0x255   :  { %4539 = vpow2.f32 %v4286_v0  ;;  %v1059_v4 = vadd.f32 %v5056_v55, %v967_v2  ;;  %v1062_v5 = vadd.f32 %v5056_v55, %v976_v3 }
 0x256   :  { %4541 = vpow2.f32 %v4283_v1 }
 0x257   :  { %v4285_v6 = vmul.f32 -1.442695, %v1059_v4  ;;  %v4288_v7 = vmul.f32 -1.442695, %v1062_v5 }
 0x258   :  { %v973_v8 = vpop.xlane.xlu0 %972 }
 0x259   :  { %4543 = vpow2.f32 %v4285_v6  ;;  %v1061_v9 = vadd.f32 %v5056_v55, %v973_v8 }
 0x25a   :  { %4545 = vpow2.f32 %v4288_v7 }
 0x25b   :  { %v4538_v10 = vpop.eup %4537  ;;  %v4287_v11 = vmul.f32 -1.442695, %v1061_v9 }
 0x25c   :  { %v1186_v12 = vadd.f32 1.0, %v4538_v10  ;;  %v982_v13 = vpop.xlane.xlu0 %981 }
 0x25d   :  { %4547 = vpow2.f32 %v4287_v11  ;;  %v1064_v15 = vadd.f32 %v5056_v55, %v982_v13 }
 0x25e   :  { %4549 = vrcp.f32 %v1186_v12 }
 0x25f   :  { %v4540_v16 = vpop.eup %4539  ;;  %v4290_v17 = vmul.f32 -1.442695, %v1064_v15 }
 0x260   :  { %v4542_v18 = vpop.eup %4541  ;;  %v1188_v19 = vadd.f32 1.0, %v4540_v16  ;;  %v979_v20 = vpop.xlane.xlu0 %978 }
 0x261   :  { %4551 = vpow2.f32 %v4290_v17  ;;  %v1063_v24 = vadd.f32 %v5056_v55, %v979_v20  ;;  %v1185_v26 = vadd.f32 1.0, %v4542_v18 }
 0x262   :  { %4553 = vrcp.f32 %v1188_v19 }
 0x263   :  { %v4544_v25 = vpop.eup %4543  ;;  %v4289_v27 = vmul.f32 -1.442695, %v1063_v24 }
 0x264   :  { %v4546_v28 = vpop.eup %4545  ;;  %v1187_v29 = vadd.f32 1.0, %v4544_v25  ;;  %v988_v30 = vpop.xlane.xlu0 %987 }
 0x265   :  { %4555 = vpow2.f32 %v4289_v27  ;;  %v1066_v33 = vadd.f32 %v5056_v55, %v988_v30  ;;  %v1190_v36 = vadd.f32 1.0, %v4546_v28 }
 0x266   :  { %4557 = vrcp.f32 %v1185_v26 }
 0x267   :  { %v4548_v40 = vpop.eup %4547  ;;  %v4292_v41 = vmul.f32 -1.442695, %v1066_v33  ;;  %4559 = vrcp.f32 %v1187_v29 }
 0x268   :  { %v4550_v44 = vpop.eup %4549  ;;  %v1189_v50 = vadd.f32 1.0, %v4548_v40  ;;  %v985_v45 = vpop.xlane.xlu0 %984 }
 0x269   :  { %4561 = vpow2.f32 %v4292_v41  ;;  %v1065_v48 = vadd.f32 %v5056_v55, %v985_v45  ;;  %v1348_v49 = vrot.slane %v4550_v44, %v5070_v31  ;;  %v1352_v47 = vrot.slane %v4550_v44, %v5074_v34 }
 0x26a   :  { %4563 = vrcp.f32 %v1190_v36  ;;  %v1356_v51 = vrot.slane %v4550_v44, %v5077_v35  ;;  %v1360_v52 = vrot.slane %v4550_v44, %v5080_v37  ;;  %v1364_v53 = vrot.slane %v4550_v44, %v5083_v38 }
 0x26b   :  { %v4552_v54 = vpop.eup %4551  ;;  %v4291_v56 = vmul.f32 -1.442695, %v1065_v48  ;;  %v1368_v57 = vrot.slane %v4550_v44, %v5086_v39  ;;  %v1372_v58 = vrot.slane %v4550_v44, %v5089_v42  ;;  %v1376_v59 = vrot.slane %v4550_v44, %v5092_v43 }
 0x26c   :  { %v5106_v60 = vpop.eup %4553  ;;  %4565 = vrcp.f32 %v1189_v50  ;;  %v1192_v61 = vadd.f32 1.0, %v4552_v54  ;;  %v994_v62 = vpop.xlane.xlu0 %993  ;;  %v2386_v63 = vcombine.low %v1348_v49, %v1352_v47  ;;  %v2387_v0 = vcombine.low %v1356_v51, %v1360_v52 }
 0x26d   :  { %4567 = vpow2.f32 %v4291_v56  ;;  %v1068_v1 = vadd.f32 %v5056_v55, %v994_v62  ;;  %v1009_v2 = vpop.xlane.xlu1 %1008  ;;  %v2388_v3 = vcombine.low %v1364_v53, %v1368_v57  ;;  %v2389_v4 = vcombine.low %v1372_v58, %v1376_v59 }
 0x26e   :  { %4569 = vrcp.f32 %v1192_v61  ;;  %v1073_v5 = vadd.f32 %v5056_v55, %v1009_v2  ;;  %v2396_v6 = vrot.slane %v2386_v63, %v5095_v46  ;;  %v2403_v7 = vrot.slane %v2387_v0, %v5095_v46 }
 0x26f   :  { %v4556_v8 = vpop.eup %4555  ;;  %v4294_v9 = vmul.f32 -1.442695, %v1068_v1  ;;  %v2410_v10 = vrot.slane %v2388_v3, %v5095_v46  ;;  %v2417_v11 = vrot.slane %v2389_v4, %v5095_v46  ;;  %v1412_v12 = vrot.slane %v5106_v60, %v5070_v31 }
 0x270   :  { %v1191_v13 = vadd.f32 1.0, %v4556_v8  ;;  %v4299_v15 = vmul.f32 -1.442695, %v1073_v5  ;;  %v991_v16 = vpop.xlane.xlu0 %990  ;;  %v2418_v17 = vcombine.low %v2396_v6, %v2403_v7  ;;  %v1416_v18 = vrot.slane %v5106_v60, %v5074_v34  ;;  %v5118_v19 = vpop.eup %4557 }
 0x271   :  { %4571 = vpow2.f32 %v4294_v9  ;;  %v1067_v20 = vadd.f32 %v5056_v55, %v991_v16  ;;  %v1015_v22 = vpop.xlane.xlu1 %1014  ;;  %v2419_v23 = vcombine.low %v2410_v10, %v2417_v11  ;;  %v1420_v24 = vrot.slane %v5106_v60, %v5077_v35  ;;  %v5123_v25 = vpop.eup %4559 }
 0x272   :  { %4573 = vrcp.f32 %v1191_v13  ;;  %v1075_v26 = vadd.f32 %v5056_v55, %v1015_v22  ;;  %v2426_v27 = vrot.slane %v2418_v17, %v5095_v46  ;;  %v1424_v28 = vrot.slane %v5106_v60, %v5080_v37 }
 0x273   :  { %v4562_v29 = vpop.eup %4561  ;;  %4575 = vpow2.f32 %v4299_v15  ;;  %v4293_v30 = vmul.f32 -1.442695, %v1067_v20  ;;  %v2433_v32 = vrot.slane %v2419_v23, %v5095_v46  ;;  %v1428_v33 = vrot.slane %v5106_v60, %v5083_v38 }
 0x274   :  { %v5132_v36 = vpop.eup %4563  ;;  %v1194_v40 = vadd.f32 1.0, %v4562_v29  ;;  %v4301_v41 = vmul.f32 -1.442695, %v1075_v26  ;;  %v997_v44 = vpop.xlane.xlu0 %996  ;;  %v1432_v50 = vrot.slane %v5106_v60, %v5086_v39  ;;  %v1436_v45 = vrot.slane %v5106_v60, %v5089_v42 }
 0x275   :  { %4577 = vpow2.f32 %v4293_v30  ;;  %v1069_v48 = vadd.f32 %v5056_v55, %v997_v44  ;;  %v1024_v49 = vpop.xlane.xlu1 %1023  ;;  %v2434_v47 = vcombine.low %v2426_v27, %v2433_v32  ;;  %v1440_v51 = vrot.slane %v5106_v60, %v5092_v43 }
 0x276   :  { %v5141_v52 = vpop.eup %4565  ;;  %4579 = vrcp.f32 %v1194_v40  ;;  %v1078_v53 = vadd.f32 %v5056_v55, %v1024_v49  ;;  %v2484_v54 = vcombine.low %v1412_v12, %v1416_v18  ;;  %v2485_v56 = vcombine.low %v1420_v24, %v1424_v28 }
 0x277   :  { %v4568_v57 = vpop.eup %4567  ;;  %4581 = vpow2.f32 %v4301_v41  ;;  %v4295_v58 = vmul.f32 -1.442695, %v1069_v48  ;;  %3909 = vperm.xlu1 %4535, %v2434_v47   ;;  %v2486_v59 = vcombine.low %v1428_v33, %v1432_v50  ;;  %v2487_v61 = vcombine.low %v1436_v45, %v1440_v51 }
 0x278   :  { %v5144_v62 = vpop.eup %4569  ;;  %v1193_v63 = vadd.f32 1.0, %v4568_v57  ;;  %v4304_v0 = vmul.f32 -1.442695, %v1078_v53  ;;  %v1012_v1 = vpop.xlane.xlu0 %1011  ;;  %v2494_v60 = vrot.slane %v2484_v54, %v5095_v46  ;;  %v2501_v2 = vrot.slane %v2485_v56, %v5095_v46 }
 0x279   :  { %4583 = vpow2.f32 %v4295_v58  ;;  %v1074_v3 = vadd.f32 %v5056_v55, %v1012_v1  ;;  %v1021_v4 = vpop.xlane.xlu1 %1020  ;;  %v2508_v5 = vrot.slane %v2486_v59, %v5095_v46  ;;  %v2515_v6 = vrot.slane %v2487_v61, %v5095_v46 }
 0x27a   :  { %4585 = vrcp.f32 %v1193_v63  ;;  %v1077_v7 = vadd.f32 %v5056_v55, %v1021_v4  ;;  %v2516_v8 = vcombine.low %v2494_v60, %v2501_v2  ;;  %v1316_v9 = vrot.slane %v5118_v19, %v5070_v31 }
 0x27b   :  { %v4572_v10 = vpop.eup %4571  ;;  %4587 = vpow2.f32 %v4304_v0  ;;  %v4300_v11 = vmul.f32 -1.442695, %v1074_v3  ;;  %v2517_v12 = vcombine.low %v2508_v5, %v2515_v6  ;;  %v1320_v13 = vrot.slane %v5118_v19, %v5074_v34 }
 0x27c   :  { %v5156_v15 = vpop.eup %4573  ;;  %v1196_v16 = vadd.f32 1.0, %v4572_v10  ;;  %v4303_v17 = vmul.f32 -1.442695, %v1077_v7  ;;  %v2524_v18 = vrot.slane %v2516_v8, %v5095_v46  ;;  %v1324_v20 = vrot.slane %v5118_v19, %v5077_v35  ;;  %v1018_v30 = vpop.xlane.xlu0 %1017 }
 0x27d   :  { %v4576_v22 = vpop.eup %4575  ;;  %4589 = vpow2.f32 %v4300_v11  ;;  %v2531_v23 = vrot.slane %v2517_v12, %v5095_v46  ;;  %v1328_v24 = vrot.slane %v5118_v19, %v5080_v37  ;;  %v1332_v26 = vrot.slane %v5118_v19, %v5083_v38  ;;  %v1030_v32 = vpop.xlane.xlu1 %1029 }
 0x27e   :  { %4591 = vrcp.f32 %v1196_v16  ;;  %v1201_v27 = vadd.f32 1.0, %v4576_v22  ;;  %v1336_v28 = vrot.slane %v5118_v19, %v5086_v39  ;;  %v1340_v29 = vrot.slane %v5118_v19, %v5089_v42 }
 0x27f   :  { %v4578_v33 = vpop.eup %4577  ;;  %4593 = vpow2.f32 %v4303_v17  ;;  %v2532_v40 = vcombine.low %v2524_v18, %v2531_v23  ;;  %v1344_v41 = vrot.slane %v5118_v19, %v5092_v43  ;;  %v2337_v44 = vcombine.low %v1316_v9, %v1320_v13 }
 0x280   :  { %v5172_v50 = vpop.eup %4579  ;;  %4595 = vrcp.f32 %v1201_v27  ;;  %v1195_v45 = vadd.f32 1.0, %v4578_v33  ;;  %v2338_v48 = vcombine.low %v1324_v20, %v1328_v24  ;;  %v2339_v49 = vcombine.low %v1332_v26, %v1336_v28  ;;  %v1000_v12 = vpop.xlane.xlu0 %999 }
 0x281   :  { %v4582_v47 = vpop.eup %4581  ;;  %3915 = vperm.xlu1 %4535, %v2532_v40   ;;  %v2340_v51 = vcombine.low %v1340_v29, %v1344_v41  ;;  %v2347_v53 = vrot.slane %v2337_v44, %v5095_v46  ;;  %v1076_v54 = vadd.f32 %v5056_v55, %v1018_v30  ;;  %v1080_v56 = vadd.f32 %v5056_v55, %v1030_v32  ;;  %v1027_v26 = vpop.xlane.xlu1 %1026 }
 0x282   :  { %4597 = vrcp.f32 %v1195_v45  ;;  %v1203_v57 = vadd.f32 1.0, %v4582_v47  ;;  %v2354_v19 = vrot.slane %v2338_v48, %v5095_v46  ;;  %v2361_v58 = vrot.slane %v2339_v49, %v5095_v46 }
 0x283   :  { %v4584_v59 = vpop.eup %4583  ;;  %v2368_v61 = vrot.slane %v2340_v51, %v5095_v46  ;;  %v4302_v63 = vmul.f32 -1.442695, %v1076_v54  ;;  %v4306_v0 = vmul.f32 -1.442695, %v1080_v56  ;;  %v1380_v1 = vrot.slane %v5123_v25, %v5070_v31 }
 0x284   :  { %v5182_v60 = vpop.eup %4585  ;;  %4599 = vrcp.f32 %v1203_v57  ;;  %v1197_v2 = vadd.f32 1.0, %v4584_v59  ;;  %v2369_v3 = vcombine.low %v2347_v53, %v2354_v19  ;;  %v1384_v4 = vrot.slane %v5123_v25, %v5074_v34 }
 0x285   :  { %v4588_v5 = vpop.eup %4587  ;;  %v2370_v6 = vcombine.low %v2361_v58, %v2368_v61  ;;  %4601 = vpow2.f32 %v4302_v63  ;;  %v1388_v7 = vrot.slane %v5123_v25, %v5077_v35  ;;  %v1392_v8 = vrot.slane %v5123_v25, %v5080_v37 }
 0x286   :  { %4603 = vrcp.f32 %v1197_v2  ;;  %v1206_v9 = vadd.f32 1.0, %v4588_v5  ;;  %v2377_v10 = vrot.slane %v2369_v3, %v5095_v46  ;;  %v1396_v11 = vrot.slane %v5123_v25, %v5083_v38  ;;  %v1036_v2 = vpop.xlane.xlu1 %1035 }
 0x287   :  { %v4590_v13 = vpop.eup %4589  ;;  %v2384_v16 = vrot.slane %v2370_v6, %v5095_v46  ;;  %4605 = vpow2.f32 %v4306_v0  ;;  %v1400_v17 = vrot.slane %v5123_v25, %v5086_v39  ;;  %v1404_v18 = vrot.slane %v5123_v25, %v5089_v42 }
 0x288   :  { %v5198_v20 = vpop.eup %4591  ;;  %4607 = vrcp.f32 %v1206_v9  ;;  %v1202_v22 = vadd.f32 1.0, %v4590_v13  ;;  %v1408_v23 = vrot.slane %v5123_v25, %v5092_v43  ;;  %v2435_v24 = vcombine.low %v1380_v1, %v1384_v4  ;;  %v1003_v1 = vpop.xlane.xlu0 %1002 }
 0x289   :  { %v4594_v27 = vpop.eup %4593  ;;  %v2385_v28 = vcombine.low %v2377_v10, %v2384_v16  ;;  %v2436_v29 = vcombine.low %v1388_v7, %v1392_v8  ;;  %v2437_v30 = vcombine.low %v1396_v11, %v1400_v17  ;;  %v1070_v32 = vadd.f32 %v5056_v55, %v1000_v12 }
 0x28a   :  { %v5203_v33 = vpop.eup %4595  ;;  %4609 = vrcp.f32 %v1202_v22  ;;  %v1205_v40 = vadd.f32 1.0, %v4594_v27  ;;  %v2438_v41 = vcombine.low %v1404_v18, %v1408_v23  ;;  %v2445_v44 = vrot.slane %v2435_v24, %v5095_v46 }
 0x28b   :  { %3906 = vperm.xlu0 %4536, %v2385_v28   ;;  %v2452_v45 = vrot.slane %v2436_v29, %v5095_v46  ;;  %v2459_v25 = vrot.slane %v2437_v30, %v5095_v46  ;;  %v4296_v48 = vmul.f32 -1.442695, %v1070_v32  ;;  %v1079_v49 = vadd.f32 %v5056_v55, %v1027_v26 }
 0x28c   :  { %v5209_v47 = vpop.eup %4597  ;;  %4611 = vrcp.f32 %v1205_v40  ;;  %v2466_v51 = vrot.slane %v2438_v41, %v5095_v46  ;;  %v1476_v53 = vrot.slane %v5132_v36, %v5070_v31  ;;  %v1480_v54 = vrot.slane %v5132_v36, %v5074_v34 }
 0x28d   :  { %v2467_v56 = vcombine.low %v2445_v44, %v2452_v45  ;;  %4613 = vpow2.f32 %v4296_v48  ;;  %v4305_v57 = vmul.f32 -1.442695, %v1079_v49  ;;  %v1484_v19 = vrot.slane %v5132_v36, %v5077_v35 }
 0x28e   :  { %v5218_v58 = vpop.eup %4599  ;;  %v2468_v59 = vcombine.low %v2459_v25, %v2466_v51  ;;  %v1488_v61 = vrot.slane %v5132_v36, %v5080_v37  ;;  %v1492_v63 = vrot.slane %v5132_v36, %v5083_v38  ;;  %v1496_v0 = vrot.slane %v5132_v36, %v5086_v39 }
 0x28f   :  { %v4602_v3 = vpop.eup %4601  ;;  %v2475_v4 = vrot.slane %v2467_v56, %v5095_v46  ;;  %4615 = vpow2.f32 %v4305_v57  ;;  %v1500_v5 = vrot.slane %v5132_v36, %v5089_v42  ;;  %v1504_v6 = vrot.slane %v5132_v36, %v5092_v43  ;;  %v1033_v56 = vpop.xlane.xlu1 %1032 }
 0x290   :  { %v5231_v7 = vpop.eup %4603  ;;  %v1204_v8 = vadd.f32 1.0, %v4602_v3  ;;  %v2482_v9 = vrot.slane %v2468_v59, %v5095_v46  ;;  %v2582_v10 = vcombine.low %v1476_v53, %v1480_v54  ;;  %v2583_v11 = vcombine.low %v1484_v19, %v1488_v61  ;;  %v1006_v54 = vpop.xlane.xlu0 %1005 }
 0x291   :  { %v4606_v12 = vpop.eup %4605  ;;  %v2584_v13 = vcombine.low %v1492_v63, %v1496_v0  ;;  %v2585_v16 = vcombine.low %v1500_v5, %v1504_v6  ;;  %v1071_v17 = vadd.f32 %v5056_v55, %v1003_v1  ;;  %v1082_v18 = vadd.f32 %v5056_v55, %v1036_v2 }
 0x292   :  { %v5236_v22 = vpop.eup %4607  ;;  %4617 = vrcp.f32 %v1204_v8  ;;  %v1208_v23 = vadd.f32 1.0, %v4606_v12  ;;  %v2483_v24 = vcombine.low %v2475_v4, %v2482_v9  ;;  %v2592_v36 = vrot.slane %v2582_v10, %v5095_v46 }
 0x293   :  { %v2599_v26 = vrot.slane %v2583_v11, %v5095_v46  ;;  %v2606_v27 = vrot.slane %v2584_v13, %v5095_v46  ;;  %v2613_v28 = vrot.slane %v2585_v16, %v5095_v46  ;;  %v4297_v29 = vmul.f32 -1.442695, %v1071_v17 }
 0x294   :  { %v5242_v30 = vpop.eup %4609  ;;  %4619 = vrcp.f32 %v1208_v23  ;;  %3912 = vperm.xlu1 %4535, %v2483_v24   ;;  %v4308_v32 = vmul.f32 -1.442695, %v1082_v18  ;;  %v1444_v40 = vrot.slane %v5141_v52, %v5070_v31  ;;  %v1448_v41 = vrot.slane %v5141_v52, %v5074_v34 }
 0x295   :  { %v2614_v44 = vcombine.low %v2592_v36, %v2599_v26  ;;  %v2615_v45 = vcombine.low %v2606_v27, %v2613_v28  ;;  %4621 = vpow2.f32 %v4297_v29  ;;  %v1452_v25 = vrot.slane %v5141_v52, %v5077_v35  ;;  %v1042_v29 = vpop.xlane.xlu1 %1041 }
 0x296   :  { %v5250_v48 = vpop.eup %4611  ;;  %4623 = vpow2.f32 %v4308_v32  ;;  %v1456_v49 = vrot.slane %v5141_v52, %v5080_v37  ;;  %v1460_v51 = vrot.slane %v5141_v52, %v5083_v38  ;;  %v1464_v53 = vrot.slane %v5141_v52, %v5086_v39 }
 0x297   :  { %v4614_v57 = vpop.eup %4613  ;;  %v2622_v19 = vrot.slane %v2614_v44, %v5095_v46  ;;  %v2629_v59 = vrot.slane %v2615_v45, %v5095_v46  ;;  %v1468_v61 = vrot.slane %v5141_v52, %v5089_v42  ;;  %v1472_v63 = vrot.slane %v5141_v52, %v5092_v43 }
 0x298   :  { %v1198_v0 = vadd.f32 1.0, %v4614_v57  ;;  %v2533_v1 = vcombine.low %v1444_v40, %v1448_v41  ;;  %v2534_v2 = vcombine.low %v1452_v25, %v1456_v49  ;;  %v2535_v3 = vcombine.low %v1460_v51, %v1464_v53 }
 0x299   :  { %v4616_v4 = vpop.eup %4615  ;;  %v2630_v5 = vcombine.low %v2622_v19, %v2629_v59  ;;  %v2536_v6 = vcombine.low %v1468_v61, %v1472_v63  ;;  %v1072_v8 = vadd.f32 %v5056_v55, %v1006_v54  ;;  %v1081_v9 = vadd.f32 %v5056_v55, %v1033_v56 }
 0x29a   :  { %4625 = vrcp.f32 %v1198_v0  ;;  %v1207_v10 = vadd.f32 1.0, %v4616_v4  ;;  %v2543_v11 = vrot.slane %v2533_v1, %v5095_v46  ;;  %v2550_v12 = vrot.slane %v2534_v2, %v5095_v46 }
 0x29b   :  { %3921 = vperm.xlu1 %4535, %v2630_v5   ;;  %v2557_v52 = vrot.slane %v2535_v3, %v5095_v46  ;;  %v2564_v13 = vrot.slane %v2536_v6, %v5095_v46  ;;  %v4298_v16 = vmul.f32 -1.442695, %v1072_v8  ;;  %v4307_v17 = vmul.f32 -1.442695, %v1081_v9 }
 0x29c   :  { %v5270_v18 = vpop.eup %4617  ;;  %4627 = vrcp.f32 %v1207_v10  ;;  %v2565_v23 = vcombine.low %v2543_v11, %v2550_v12  ;;  %v1540_v24 = vrot.slane %v5144_v62, %v5070_v31  ;;  %v1544_v36 = vrot.slane %v5144_v62, %v5074_v34 }
 0x29d   :  { %v2566_v26 = vcombine.low %v2557_v52, %v2564_v13  ;;  %4629 = vpow2.f32 %v4298_v16  ;;  %v1548_v27 = vrot.slane %v5144_v62, %v5077_v35  ;;  %v1552_v28 = vrot.slane %v5144_v62, %v5080_v37 }
 0x29e   :  { %v5280_v32 = vpop.eup %4619  ;;  %v2573_v40 = vrot.slane %v2565_v23, %v5095_v46  ;;  %4631 = vpow2.f32 %v4307_v17  ;;  %v1556_v41 = vrot.slane %v5144_v62, %v5083_v38  ;;  %v1560_v44 = vrot.slane %v5144_v62, %v5086_v39 }
 0x29f   :  { %v4622_v45 = vpop.eup %4621  ;;  %v2580_v25 = vrot.slane %v2566_v26, %v5095_v46  ;;  %v1564_v49 = vrot.slane %v5144_v62, %v5089_v42  ;;  %v1568_v51 = vrot.slane %v5144_v62, %v5092_v43  ;;  %v2680_v53 = vcombine.low %v1540_v24, %v1544_v36 }
 0x2a0   :  { %v4624_v54 = vpop.eup %4623  ;;  %v1199_v56 = vadd.f32 1.0, %v4622_v45  ;;  %v2681_v57 = vcombine.low %v1548_v27, %v1552_v28  ;;  %v2682_v19 = vcombine.low %v1556_v41, %v1560_v44  ;;  %v1084_v59 = vadd.f32 %v5056_v55, %v1042_v29  ;;  %v1039_v27 = vpop.xlane.xlu1 %1038 }
 0x2a1   :  { %v1210_v61 = vadd.f32 1.0, %v4624_v54  ;;  %v2581_v63 = vcombine.low %v2573_v40, %v2580_v25  ;;  %v2683_v0 = vcombine.low %v1564_v49, %v1568_v51  ;;  %v2690_v1 = vrot.slane %v2680_v53, %v5095_v46 }
 0x2a2   :  { %4633 = vrcp.f32 %v1199_v56  ;;  %v2697_v2 = vrot.slane %v2681_v57, %v5095_v46  ;;  %v2704_v3 = vrot.slane %v2682_v19, %v5095_v46  ;;  %v4310_v4 = vmul.f32 -1.442695, %v1084_v59 }
 0x2a3   :  { %4635 = vrcp.f32 %v1210_v61  ;;  %3918 = vperm.xlu1 %4535, %v2581_v63   ;;  %v2711_v62 = vrot.slane %v2683_v0, %v5095_v46  ;;  %v1508_v5 = vrot.slane %v5156_v15, %v5070_v31  ;;  %v1512_v6 = vrot.slane %v5156_v15, %v5074_v34 }
 0x2a4   :  { %v5301_v8 = vpop.eup %4625  ;;  %v2712_v9 = vcombine.low %v2690_v1, %v2697_v2  ;;  %4637 = vpow2.f32 %v4310_v4  ;;  %v1516_v10 = vrot.slane %v5156_v15, %v5077_v35  ;;  %v1520_v11 = vrot.slane %v5156_v15, %v5080_v37 }
 0x2a5   :  { %v2713_v12 = vcombine.low %v2704_v3, %v2711_v62  ;;  %v1524_v52 = vrot.slane %v5156_v15, %v5083_v38  ;;  %v1528_v13 = vrot.slane %v5156_v15, %v5086_v39  ;;  %v1532_v16 = vrot.slane %v5156_v15, %v5089_v42 }
 0x2a6   :  { %v5313_v17 = vpop.eup %4627  ;;  %v2720_v23 = vrot.slane %v2712_v9, %v5095_v46  ;;  %v1536_v24 = vrot.slane %v5156_v15, %v5092_v43  ;;  %v2631_v36 = vcombine.low %v1508_v5, %v1512_v6  ;;  %v2632_v26 = vcombine.low %v1516_v10, %v1520_v11  ;;  %v1048_v6 = vpop.xlane.xlu1 %1047 }
 0x2a7   :  { %v4630_v28 = vpop.eup %4629  ;;  %v2727_v29 = vrot.slane %v2713_v12, %v5095_v46  ;;  %v2633_v40 = vcombine.low %v1524_v52, %v1528_v13  ;;  %v1604_v41 = vrot.slane %v5172_v50, %v5070_v31  ;;  %v1608_v44 = vrot.slane %v5172_v50, %v5074_v34 }
 0x2a8   :  { %v4632_v45 = vpop.eup %4631  ;;  %v1200_v25 = vadd.f32 1.0, %v4630_v28  ;;  %v2634_v49 = vcombine.low %v1532_v16, %v1536_v24  ;;  %v2641_v51 = vrot.slane %v2631_v36, %v5095_v46  ;;  %v2648_v15 = vrot.slane %v2632_v26, %v5095_v46 }
 0x2a9   :  { %v1209_v53 = vadd.f32 1.0, %v4632_v45  ;;  %v2728_v54 = vcombine.low %v2720_v23, %v2727_v29  ;;  %v2655_v56 = vrot.slane %v2633_v40, %v5095_v46  ;;  %v1612_v57 = vrot.slane %v5172_v50, %v5077_v35 }
 0x2aa   :  { %4639 = vrcp.f32 %v1200_v25  ;;  %v2662_v19 = vrot.slane %v2634_v49, %v5095_v46  ;;  %v2663_v59 = vcombine.low %v2641_v51, %v2648_v15  ;;  %v1616_v61 = vrot.slane %v5172_v50, %v5080_v37 }
 0x2ab   :  { %4641 = vrcp.f32 %v1209_v53  ;;  %3927 = vperm.xlu1 %4535, %v2728_v54   ;;  %v1620_v63 = vrot.slane %v5172_v50, %v5083_v38  ;;  %v1624_v0 = vrot.slane %v5172_v50, %v5086_v39  ;;  %v1628_v1 = vrot.slane %v5172_v50, %v5089_v42  ;;  %v1045_v54 = vpop.xlane.xlu1 %1044 }
 0x2ac   :  { %v5337_v2 = vpop.eup %4633  ;;  %v2664_v3 = vcombine.low %v2655_v56, %v2662_v19  ;;  %v2671_v4 = vrot.slane %v2663_v59, %v5095_v46  ;;  %v1632_v62 = vrot.slane %v5172_v50, %v5092_v43  ;;  %v2778_v5 = vcombine.low %v1604_v41, %v1608_v44 }
 0x2ad   :  { %v5342_v9 = vpop.eup %4635  ;;  %v2779_v10 = vcombine.low %v1612_v57, %v1616_v61  ;;  %v2780_v11 = vcombine.low %v1620_v63, %v1624_v0  ;;  %v1083_v12 = vadd.f32 %v5056_v55, %v1039_v27  ;;  %v1572_v52 = vrot.slane %v5182_v60, %v5070_v31 }
 0x2ae   :  { %v4638_v13 = vpop.eup %4637  ;;  %v2678_v16 = vrot.slane %v2664_v3, %v5095_v46  ;;  %v2781_v23 = vcombine.low %v1628_v1, %v1632_v62  ;;  %v2788_v24 = vrot.slane %v2778_v5, %v5095_v46  ;;  %v1576_v50 = vrot.slane %v5182_v60, %v5074_v34 }
 0x2af   :  { %v1212_v36 = vadd.f32 1.0, %v4638_v13  ;;  %v2795_v26 = vrot.slane %v2779_v10, %v5095_v46  ;;  %v2802_v28 = vrot.slane %v2780_v11, %v5095_v46  ;;  %v4309_v29 = vmul.f32 -1.442695, %v1083_v12 }
 0x2b0   :  { %v2679_v40 = vcombine.low %v2671_v4, %v2678_v16  ;;  %v2809_v27 = vrot.slane %v2781_v23, %v5095_v46  ;;  %v1580_v41 = vrot.slane %v5182_v60, %v5077_v35  ;;  %v1584_v44 = vrot.slane %v5182_v60, %v5080_v37 }
 0x2b1   :  { %4643 = vrcp.f32 %v1212_v36  ;;  %v2810_v45 = vcombine.low %v2788_v24, %v2795_v26  ;;  %v1588_v25 = vrot.slane %v5182_v60, %v5083_v38  ;;  %v1592_v49 = vrot.slane %v5182_v60, %v5086_v39 }
 0x2b2   :  { %3924 = vperm.xlu1 %4535, %v2679_v40   ;;  %v2811_v51 = vcombine.low %v2802_v28, %v2809_v27  ;;  %4645 = vpow2.f32 %v4309_v29  ;;  %v1596_v15 = vrot.slane %v5182_v60, %v5089_v42  ;;  %v1600_v53 = vrot.slane %v5182_v60, %v5092_v43  ;;  %v1051_v28 = vpop.xlane.xlu1 %1050 }
 0x2b3   :  { %v2818_v56 = vrot.slane %v2810_v45, %v5095_v46  ;;  %v2729_v57 = vcombine.low %v1572_v52, %v1576_v50  ;;  %v2730_v19 = vcombine.low %v1580_v41, %v1584_v44  ;;  %v2731_v59 = vcombine.low %v1588_v25, %v1592_v49 }
 0x2b4   :  { %v5367_v61 = vpop.eup %4639  ;;  %v2825_v63 = vrot.slane %v2811_v51, %v5095_v46  ;;  %v2732_v0 = vcombine.low %v1596_v15, %v1600_v53  ;;  %v1086_v1 = vadd.f32 %v5056_v55, %v1048_v6  ;;  %v1668_v3 = vrot.slane %v5198_v20, %v5070_v31 }
 0x2b5   :  { %v5373_v4 = vpop.eup %4641  ;;  %v2739_v60 = vrot.slane %v2729_v57, %v5095_v46  ;;  %v2746_v62 = vrot.slane %v2730_v19, %v5095_v46  ;;  %v2753_v5 = vrot.slane %v2731_v59, %v5095_v46  ;;  %v1672_v10 = vrot.slane %v5198_v20, %v5074_v34 }
 0x2b6   :  { %v2826_v11 = vcombine.low %v2818_v56, %v2825_v63  ;;  %v2760_v12 = vrot.slane %v2732_v0, %v5095_v46  ;;  %v4312_v52 = vmul.f32 -1.442695, %v1086_v1  ;;  %v1676_v6 = vrot.slane %v5198_v20, %v5077_v35 }
 0x2b7   :  { %v2761_v13 = vcombine.low %v2739_v60, %v2746_v62  ;;  %v1680_v16 = vrot.slane %v5198_v20, %v5080_v37  ;;  %v1684_v23 = vrot.slane %v5198_v20, %v5083_v38  ;;  %v1688_v24 = vrot.slane %v5198_v20, %v5086_v39 }
 0x2b8   :  { %3933 = vperm.xlu0 %4536, %v2826_v11   ;;  %v2762_v50 = vcombine.low %v2753_v5, %v2760_v12  ;;  %4647 = vpow2.f32 %v4312_v52  ;;  %v1692_v36 = vrot.slane %v5198_v20, %v5089_v42  ;;  %v1696_v26 = vrot.slane %v5198_v20, %v5092_v43  ;;  %v1054_v11 = vpop.xlane.xlu1 %1053 }
 0x2b9   :  { %v2769_v29 = vrot.slane %v2761_v13, %v5095_v46  ;;  %v2876_v40 = vcombine.low %v1668_v3, %v1672_v10  ;;  %v2877_v27 = vcombine.low %v1676_v6, %v1680_v16  ;;  %v2878_v41 = vcombine.low %v1684_v23, %v1688_v24 }
 0x2ba   :  { %v2776_v44 = vrot.slane %v2762_v50, %v5095_v46  ;;  %v2879_v45 = vcombine.low %v1692_v36, %v1696_v26  ;;  %v1085_v25 = vadd.f32 %v5056_v55, %v1045_v54  ;;  %v1636_v49 = vrot.slane %v5209_v47, %v5070_v31 }
 0x2bb   :  { %v5398_v51 = vpop.eup %4643  ;;  %v2886_v15 = vrot.slane %v2876_v40, %v5095_v46  ;;  %v2893_v20 = vrot.slane %v2877_v27, %v5095_v46  ;;  %v2900_v53 = vrot.slane %v2878_v41, %v5095_v46  ;;  %v1640_v56 = vrot.slane %v5209_v47, %v5074_v34 }
 0x2bc   :  { %v4646_v57 = vpop.eup %4645  ;;  %v2777_v19 = vcombine.low %v2769_v29, %v2776_v44  ;;  %v2907_v59 = vrot.slane %v2879_v45, %v5095_v46  ;;  %v4311_v63 = vmul.f32 -1.442695, %v1085_v25  ;;  %v1644_v54 = vrot.slane %v5209_v47, %v5077_v35 }
 0x2bd   :  { %v1211_v0 = vadd.f32 1.0, %v4646_v57  ;;  %v2908_v1 = vcombine.low %v2886_v15, %v2893_v20  ;;  %v1648_v3 = vrot.slane %v5209_v47, %v5080_v37  ;;  %v1652_v60 = vrot.slane %v5209_v47, %v5083_v38 }
 0x2be   :  { %3930 = vperm.xlu1 %4535, %v2777_v19   ;;  %v2909_v62 = vcombine.low %v2900_v53, %v2907_v59  ;;  %4649 = vpow2.f32 %v4311_v63  ;;  %v1656_v5 = vrot.slane %v5209_v47, %v5086_v39  ;;  %v1660_v10 = vrot.slane %v5209_v47, %v5089_v42 }
 0x2bf   :  { %4651 = vrcp.f32 %v1211_v0  ;;  %v2916_v12 = vrot.slane %v2908_v1, %v5095_v46  ;;  %v1664_v52 = vrot.slane %v5209_v47, %v5092_v43  ;;  %v2827_v6 = vcombine.low %v1636_v49, %v1640_v56 }
 0x2c0   :  { %v2923_v13 = vrot.slane %v2909_v62, %v5095_v46  ;;  %v2828_v16 = vcombine.low %v1644_v54, %v1648_v3  ;;  %v2829_v23 = vcombine.low %v1652_v60, %v1656_v5  ;;  %v1087_v24 = vadd.f32 %v5056_v55, %v1051_v28 }
 0x2c1   :  { %v2830_v50 = vcombine.low %v1660_v10, %v1664_v52  ;;  %v2837_v36 = vrot.slane %v2827_v6, %v5095_v46  ;;  %v1088_v26 = vadd.f32 %v5056_v55, %v1054_v11  ;;  %v1860_v29 = vrot.slane %v5242_v30, %v5070_v31 }
 0x2c2   :  { %v4648_v40 = vpop.eup %4647  ;;  %v2924_v27 = vcombine.low %v2916_v12, %v2923_v13  ;;  %v2844_v41 = vrot.slane %v2828_v16, %v5095_v46  ;;  %v2851_v47 = vrot.slane %v2829_v23, %v5095_v46  ;;  %v4313_v44 = vmul.f32 -1.442695, %v1087_v24 }
 0x2c3   :  { %v1214_v45 = vadd.f32 1.0, %v4648_v40  ;;  %v2858_v25 = vrot.slane %v2830_v50, %v5095_v46  ;;  %v4314_v49 = vmul.f32 -1.442695, %v1088_v26  ;;  %v1864_v28 = vrot.slane %v5242_v30, %v5074_v34 }
 0x2c4   :  { %3939 = vperm.xlu1 %4535, %v2924_v27   ;;  %v2859_v15 = vcombine.low %v2837_v36, %v2844_v41  ;;  %4653 = vpow2.f32 %v4313_v44  ;;  %v1868_v55 = vrot.slane %v5242_v30, %v5077_v35  ;;  %v1872_v20 = vrot.slane %v5242_v30, %v5080_v37 }
 0x2c5   :  { %4655 = vrcp.f32 %v1214_v45  ;;  %v2860_v53 = vcombine.low %v2851_v47, %v2858_v25  ;;  %v1876_v56 = vrot.slane %v5242_v30, %v5083_v38  ;;  %v1880_v57 = vrot.slane %v5242_v30, %v5086_v39 }
 0x2c6   :  { %v2867_v19 = vrot.slane %v2859_v15, %v5095_v46  ;;  %4657 = vpow2.f32 %v4314_v49  ;;  %v1884_v59 = vrot.slane %v5242_v30, %v5089_v42  ;;  %v1888_v63 = vrot.slane %v5242_v30, %v5092_v43 }
 0x2c7   :  { %v2874_v54 = vrot.slane %v2860_v53, %v5095_v46  ;;  %v3170_v0 = vcombine.low %v1860_v29, %v1864_v28  ;;  %v3171_v1 = vcombine.low %v1868_v55, %v1872_v20  ;;  %v3172_v3 = vcombine.low %v1876_v56, %v1880_v57 }
 0x2c8   :  { %v4650_v60 = vpop.eup %4649  ;;  %v3173_v62 = vcombine.low %v1884_v59, %v1888_v63  ;;  %v1924_v5 = vrot.slane %v5270_v18, %v5070_v31  ;;  %v1928_v10 = vrot.slane %v5270_v18, %v5074_v34  ;;  %v1932_v11 = vrot.slane %v5270_v18, %v5077_v35 }
 0x2c9   :  { %v5450_v12 = vpop.eup %4651  ;;  %v1213_v52 = vadd.f32 1.0, %v4650_v60  ;;  %v2875_v30 = vcombine.low %v2867_v19, %v2874_v54  ;;  %v3180_v6 = vrot.slane %v3170_v0, %v5095_v46  ;;  %v3187_v13 = vrot.slane %v3171_v1, %v5095_v46 }
 0x2ca   :  { %v3194_v16 = vrot.slane %v3172_v3, %v5095_v46  ;;  %v3201_v23 = vrot.slane %v3173_v62, %v5095_v46  ;;  %v1936_v24 = vrot.slane %v5270_v18, %v5080_v37  ;;  %v1940_v50 = vrot.slane %v5270_v18, %v5083_v38 }
 0x2cb   :  { %4659 = vrcp.f32 %v1213_v52  ;;  %3936 = vperm.xlu1 %4535, %v2875_v30   ;;  %v3202_v36 = vcombine.low %v3180_v6, %v3187_v13  ;;  %v1944_v26 = vrot.slane %v5270_v18, %v5086_v39  ;;  %v1948_v29 = vrot.slane %v5270_v18, %v5089_v42 }
 0x2cc   :  { %v3203_v40 = vcombine.low %v3194_v16, %v3201_v23  ;;  %v1952_v27 = vrot.slane %v5270_v18, %v5092_v43  ;;  %v3268_v41 = vcombine.low %v1924_v5, %v1928_v10  ;;  %v3269_v47 = vcombine.low %v1932_v11, %v1936_v24 }
 0x2cd   :  { %v3210_v44 = vrot.slane %v3202_v36, %v5095_v46  ;;  %v3270_v45 = vcombine.low %v1940_v50, %v1944_v26  ;;  %v1988_v25 = vrot.slane %v5236_v22, %v5070_v31  ;;  %v1992_v49 = vrot.slane %v5236_v22, %v5074_v34 }
 0x2ce   :  { %v4654_v28 = vpop.eup %4653  ;;  %v3217_v15 = vrot.slane %v3203_v40, %v5095_v46  ;;  %v3271_v55 = vcombine.low %v1948_v29, %v1952_v27  ;;  %v3278_v20 = vrot.slane %v3268_v41, %v5095_v46  ;;  %v3285_v53 = vrot.slane %v3269_v47, %v5095_v46 }
 0x2cf   :  { %v5474_v18 = vpop.eup %4655  ;;  %v1215_v56 = vadd.f32 1.0, %v4654_v28  ;;  %v3292_v57 = vrot.slane %v3270_v45, %v5095_v46  ;;  %v1996_v19 = vrot.slane %v5236_v22, %v5077_v35  ;;  %v2000_v59 = vrot.slane %v5236_v22, %v5080_v37 }
 0x2d0   :  { %v4658_v63 = vpop.eup %4657  ;;  %v3218_v54 = vcombine.low %v3210_v44, %v3217_v15  ;;  %v3299_v0 = vrot.slane %v3271_v55, %v5095_v46  ;;  %v3300_v1 = vcombine.low %v3278_v20, %v3285_v53  ;;  %v2004_v3 = vrot.slane %v5236_v22, %v5083_v38 }
 0x2d1   :  { %4661 = vrcp.f32 %v1215_v56  ;;  %v1216_v60 = vadd.f32 1.0, %v4658_v63  ;;  %v2008_v62 = vrot.slane %v5236_v22, %v5086_v39  ;;  %v2012_v5 = vrot.slane %v5236_v22, %v5089_v42 }
 0x2d2   :  { %3957 = vperm.xlu0 %4536, %v3218_v54   ;;  %v3301_v10 = vcombine.low %v3292_v57, %v3299_v0  ;;  %v3308_v11 = vrot.slane %v3300_v1, %v5095_v46  ;;  %v2016_v52 = vrot.slane %v5236_v22, %v5092_v43  ;;  %v3366_v30 = vcombine.low %v1988_v25, %v1992_v49 }
 0x2d3   :  { %4663 = vrcp.f32 %v1216_v60  ;;  %v3367_v6 = vcombine.low %v1996_v19, %v2000_v59  ;;  %v3368_v13 = vcombine.low %v2004_v3, %v2008_v62  ;;  %v1732_v16 = vrot.slane %v5301_v8, %v5070_v31 }
 0x2d4   :  { %v3315_v23 = vrot.slane %v3301_v10, %v5095_v46  ;;  %v3369_v24 = vcombine.low %v2012_v5, %v2016_v52  ;;  %v3376_v50 = vrot.slane %v3366_v30, %v5095_v46  ;;  %v1736_v36 = vrot.slane %v5301_v8, %v5074_v34 }
 0x2d5   :  { %v5497_v26 = vpop.eup %4659  ;;  %v3383_v29 = vrot.slane %v3367_v6, %v5095_v46  ;;  %v3390_v22 = vrot.slane %v3368_v13, %v5095_v46  ;;  %v1740_v40 = vrot.slane %v5301_v8, %v5077_v35  ;;  %v1744_v27 = vrot.slane %v5301_v8, %v5080_v37 }
 0x2d6   :  { %v3316_v41 = vcombine.low %v3308_v11, %v3315_v23  ;;  %v3397_v47 = vrot.slane %v3369_v24, %v5095_v46  ;;  %v1748_v44 = vrot.slane %v5301_v8, %v5083_v38  ;;  %v1752_v45 = vrot.slane %v5301_v8, %v5086_v39 }
 0x2d7   :  { %v3398_v25 = vcombine.low %v3376_v50, %v3383_v29  ;;  %v1756_v49 = vrot.slane %v5301_v8, %v5089_v42  ;;  %v1760_v28 = vrot.slane %v5301_v8, %v5092_v43  ;;  %v2974_v15 = vcombine.low %v1732_v16, %v1736_v36 }
 0x2d8   :  { %3963 = vperm.xlu0 %4536, %v3316_v41   ;;  %v3399_v55 = vcombine.low %v3390_v22, %v3397_v47  ;;  %v2975_v20 = vcombine.low %v1740_v40, %v1744_v27  ;;  %v2976_v53 = vcombine.low %v1748_v44, %v1752_v45  ;;  %v2052_v56 = vrot.slane %v5280_v32, %v5070_v31 }
 0x2d9   :  { %v3406_v57 = vrot.slane %v3398_v25, %v5095_v46  ;;  %v2977_v19 = vcombine.low %v1756_v49, %v1760_v28  ;;  %v2984_v59 = vrot.slane %v2974_v15, %v5095_v46  ;;  %v2056_v63 = vrot.slane %v5280_v32, %v5074_v34 }
 0x2da   :  { %v3413_v54 = vrot.slane %v3399_v55, %v5095_v46  ;;  %v2991_v8 = vrot.slane %v2975_v20, %v5095_v46  ;;  %v2998_v0 = vrot.slane %v2976_v53, %v5095_v46  ;;  %v2060_v1 = vrot.slane %v5280_v32, %v5077_v35 }
 0x2db   :  { %v5525_v3 = vpop.eup %4661  ;;  %v3005_v60 = vrot.slane %v2977_v19, %v5095_v46  ;;  %v2064_v62 = vrot.slane %v5280_v32, %v5080_v37  ;;  %v2068_v5 = vrot.slane %v5280_v32, %v5083_v38  ;;  %v2072_v10 = vrot.slane %v5280_v32, %v5086_v39 }
 0x2dc   :  { %v3414_v11 = vcombine.low %v3406_v57, %v3413_v54  ;;  %v3006_v52 = vcombine.low %v2984_v59, %v2991_v8  ;;  %v2076_v30 = vrot.slane %v5280_v32, %v5089_v42  ;;  %v2080_v6 = vrot.slane %v5280_v32, %v5092_v43 }
 0x2dd   :  { %v5538_v13 = vpop.eup %4663  ;;  %v3007_v16 = vcombine.low %v2998_v0, %v3005_v60  ;;  %v3464_v23 = vcombine.low %v2052_v56, %v2056_v63  ;;  %v3465_v24 = vcombine.low %v2060_v1, %v2064_v62  ;;  %v3466_v50 = vcombine.low %v2068_v5, %v2072_v10 }
 0x2de   :  { %3969 = vperm.xlu0 %4536, %v3414_v11   ;;  %v3014_v36 = vrot.slane %v3006_v52, %v5095_v46  ;;  %v3467_v29 = vcombine.low %v2076_v30, %v2080_v6  ;;  %v1700_v22 = vrot.slane %v5231_v7, %v5070_v31  ;;  %v1704_v40 = vrot.slane %v5231_v7, %v5074_v34 }
 0x2df   :  { %v3021_v27 = vrot.slane %v3007_v16, %v5095_v46  ;;  %v3474_v32 = vrot.slane %v3464_v23, %v5095_v46  ;;  %v3481_v41 = vrot.slane %v3465_v24, %v5095_v46  ;;  %v3488_v47 = vrot.slane %v3466_v50, %v5095_v46 }
 0x2e0   :  { %v3495_v44 = vrot.slane %v3467_v29, %v5095_v46  ;;  %v1708_v45 = vrot.slane %v5231_v7, %v5077_v35  ;;  %v1712_v25 = vrot.slane %v5231_v7, %v5080_v37  ;;  %v1716_v49 = vrot.slane %v5231_v7, %v5083_v38 }
 0x2e1   :  { %v3022_v28 = vcombine.low %v3014_v36, %v3021_v27  ;;  %v3496_v15 = vcombine.low %v3474_v32, %v3481_v41  ;;  %v1720_v55 = vrot.slane %v5231_v7, %v5086_v39  ;;  %v1724_v20 = vrot.slane %v5231_v7, %v5089_v42 }
 0x2e2   :  { %v3497_v53 = vcombine.low %v3488_v47, %v3495_v44  ;;  %v1728_v56 = vrot.slane %v5231_v7, %v5092_v43  ;;  %v2925_v57 = vcombine.low %v1700_v22, %v1704_v40  ;;  %v2926_v19 = vcombine.low %v1708_v45, %v1712_v25 }
 0x2e3   :  { %3945 = vperm.xlu1 %4535, %v3022_v28   ;;  %v3504_v59 = vrot.slane %v3496_v15, %v5095_v46  ;;  %v2927_v63 = vcombine.low %v1716_v49, %v1720_v55  ;;  %v2116_v54 = vrot.slane %v5342_v9, %v5070_v31  ;;  %v2120_v8 = vrot.slane %v5342_v9, %v5074_v34 }
 0x2e4   :  { %v3511_v0 = vrot.slane %v3497_v53, %v5095_v46  ;;  %v2928_v1 = vcombine.low %v1724_v20, %v1728_v56  ;;  %v2935_v60 = vrot.slane %v2925_v57, %v5095_v46  ;;  %v2942_v62 = vrot.slane %v2926_v19, %v5095_v46 }
 0x2e5   :  { %v2949_v7 = vrot.slane %v2927_v63, %v5095_v46  ;;  %v2124_v5 = vrot.slane %v5342_v9, %v5077_v35  ;;  %v2128_v10 = vrot.slane %v5342_v9, %v5080_v37  ;;  %v2132_v11 = vrot.slane %v5342_v9, %v5083_v38 }
 0x2e6   :  { %v3512_v52 = vcombine.low %v3504_v59, %v3511_v0  ;;  %v2956_v30 = vrot.slane %v2928_v1, %v5095_v46  ;;  %v2957_v6 = vcombine.low %v2935_v60, %v2942_v62  ;;  %v2136_v16 = vrot.slane %v5342_v9, %v5086_v39 }
 0x2e7   :  { %v2140_v23 = vrot.slane %v5342_v9, %v5089_v42  ;;  %v2144_v24 = vrot.slane %v5342_v9, %v5092_v43  ;;  %v3562_v50 = vcombine.low %v2116_v54, %v2120_v8  ;;  %v3563_v36 = vcombine.low %v2124_v5, %v2128_v10 }
 0x2e8   :  { %3975 = vperm.xlu0 %4536, %v3512_v52   ;;  %v2958_v29 = vcombine.low %v2949_v7, %v2956_v30  ;;  %v2965_v22 = vrot.slane %v2957_v6, %v5095_v46  ;;  %v3564_v40 = vcombine.low %v2132_v11, %v2136_v16  ;;  %v1828_v27 = vrot.slane %v5203_v33, %v5070_v31 }
 0x2e9   :  { %v3565_v32 = vcombine.low %v2140_v23, %v2144_v24  ;;  %v3572_v41 = vrot.slane %v3562_v50, %v5095_v46  ;;  %v3579_v47 = vrot.slane %v3563_v36, %v5095_v46  ;;  %v1832_v44 = vrot.slane %v5203_v33, %v5074_v34 }
 0x2ea   :  { %v2972_v9 = vrot.slane %v2958_v29, %v5095_v46  ;;  %v3586_v45 = vrot.slane %v3564_v40, %v5095_v46  ;;  %v1836_v25 = vrot.slane %v5203_v33, %v5077_v35  ;;  %v1840_v49 = vrot.slane %v5203_v33, %v5080_v37 }
 0x2eb   :  { %v3593_v28 = vrot.slane %v3565_v32, %v5095_v46  ;;  %v3594_v15 = vcombine.low %v3572_v41, %v3579_v47  ;;  %v1844_v55 = vrot.slane %v5203_v33, %v5083_v38  ;;  %v1848_v20 = vrot.slane %v5203_v33, %v5086_v39 }
 0x2ec   :  { %v2973_v53 = vcombine.low %v2965_v22, %v2972_v9  ;;  %v1852_v56 = vrot.slane %v5203_v33, %v5089_v42  ;;  %v1856_v57 = vrot.slane %v5203_v33, %v5092_v43  ;;  %v3121_v19 = vcombine.low %v1828_v27, %v1832_v44 }
 0x2ed   :  { %v3595_v59 = vcombine.low %v3586_v45, %v3593_v28  ;;  %v3602_v63 = vrot.slane %v3594_v15, %v5095_v46  ;;  %v3122_v54 = vcombine.low %v1836_v25, %v1840_v49  ;;  %v3123_v8 = vcombine.low %v1844_v55, %v1848_v20 }
 0x2ee   :  { %3942 = vperm.xlu1 %4535, %v2973_v53   ;;  %v3124_v0 = vcombine.low %v1852_v56, %v1856_v57  ;;  %v3131_v1 = vrot.slane %v3121_v19, %v5095_v46  ;;  %v1892_v60 = vrot.slane %v5218_v58, %v5070_v31  ;;  %v1896_v62 = vrot.slane %v5218_v58, %v5074_v34 }
 0x2ef   :  { %v3609_v7 = vrot.slane %v3595_v59, %v5095_v46  ;;  %v3138_v33 = vrot.slane %v3122_v54, %v5095_v46  ;;  %v3145_v5 = vrot.slane %v3123_v8, %v5095_v46  ;;  %v1900_v10 = vrot.slane %v5218_v58, %v5077_v35 }
 0x2f0   :  { %v3152_v11 = vrot.slane %v3124_v0, %v5095_v46  ;;  %v1904_v52 = vrot.slane %v5218_v58, %v5080_v37  ;;  %v1908_v30 = vrot.slane %v5218_v58, %v5083_v38  ;;  %v1912_v6 = vrot.slane %v5218_v58, %v5086_v39 }
 0x2f1   :  { %v3610_v16 = vcombine.low %v3602_v63, %v3609_v7  ;;  %v3153_v23 = vcombine.low %v3131_v1, %v3138_v33  ;;  %v1916_v24 = vrot.slane %v5218_v58, %v5089_v42  ;;  %v1920_v50 = vrot.slane %v5218_v58, %v5092_v43 }
 0x2f2   :  { %v3154_v36 = vcombine.low %v3145_v5, %v3152_v11  ;;  %v3219_v29 = vcombine.low %v1892_v60, %v1896_v62  ;;  %v3220_v22 = vcombine.low %v1900_v10, %v1904_v52  ;;  %v3221_v40 = vcombine.low %v1908_v30, %v1912_v6 }
 0x2f3   :  { %3981 = vperm.xlu0 %4536, %v3610_v16   ;;  %v3161_v27 = vrot.slane %v3153_v23, %v5095_v46  ;;  %v3222_v32 = vcombine.low %v1916_v24, %v1920_v50  ;;  %v2180_v41 = vrot.slane %v5398_v51, %v5070_v31  ;;  %v2184_v47 = vrot.slane %v5398_v51, %v5074_v34 }
 0x2f4   :  { %v3168_v44 = vrot.slane %v3154_v36, %v5095_v46  ;;  %v3229_v9 = vrot.slane %v3219_v29, %v5095_v46  ;;  %v3236_v58 = vrot.slane %v3220_v22, %v5095_v46  ;;  %v3243_v45 = vrot.slane %v3221_v40, %v5095_v46 }
 0x2f5   :  { %v3250_v25 = vrot.slane %v3222_v32, %v5095_v46  ;;  %v2188_v49 = vrot.slane %v5398_v51, %v5077_v35  ;;  %v2192_v28 = vrot.slane %v5398_v51, %v5080_v37  ;;  %v2196_v15 = vrot.slane %v5398_v51, %v5083_v38 }
 0x2f6   :  { %v3169_v55 = vcombine.low %v3161_v27, %v3168_v44  ;;  %v3251_v20 = vcombine.low %v3229_v9, %v3236_v58  ;;  %v2200_v53 = vrot.slane %v5398_v51, %v5086_v39  ;;  %v2204_v56 = vrot.slane %v5398_v51, %v5089_v42 }
 0x2f7   :  { %v3252_v57 = vcombine.low %v3243_v45, %v3250_v25  ;;  %v2208_v19 = vrot.slane %v5398_v51, %v5092_v43  ;;  %v3660_v59 = vcombine.low %v2180_v41, %v2184_v47  ;;  %v3661_v63 = vcombine.low %v2188_v49, %v2192_v28 }
 0x2f8   :  { %3954 = vperm.xlu1 %4535, %v3169_v55   ;;  %v3259_v54 = vrot.slane %v3251_v20, %v5095_v46  ;;  %v3662_v8 = vcombine.low %v2196_v15, %v2200_v53  ;;  %v1956_v0 = vrot.slane %v5250_v48, %v5070_v31  ;;  %v1960_v1 = vrot.slane %v5250_v48, %v5074_v34 }
 0x2f9   :  { %v3266_v60 = vrot.slane %v3252_v57, %v5095_v46  ;;  %v3663_v62 = vcombine.low %v2204_v56, %v2208_v19  ;;  %v3670_v7 = vrot.slane %v3660_v59, %v5095_v46  ;;  %v3677_v33 = vrot.slane %v3661_v63, %v5095_v46 }
 0x2fa   :  { %v3684_v51 = vrot.slane %v3662_v8, %v5095_v46  ;;  %v1964_v5 = vrot.slane %v5250_v48, %v5077_v35  ;;  %v1968_v10 = vrot.slane %v5250_v48, %v5080_v37  ;;  %v1972_v11 = vrot.slane %v5250_v48, %v5083_v38 }
 0x2fb   :  { %v3267_v52 = vcombine.low %v3259_v54, %v3266_v60  ;;  %v3691_v30 = vrot.slane %v3663_v62, %v5095_v46  ;;  %v3692_v6 = vcombine.low %v3670_v7, %v3677_v33  ;;  %v1976_v16 = vrot.slane %v5250_v48, %v5086_v39 }
 0x2fc   :  { %v1980_v23 = vrot.slane %v5250_v48, %v5089_v42  ;;  %v1984_v24 = vrot.slane %v5250_v48, %v5092_v43  ;;  %v3317_v50 = vcombine.low %v1956_v0, %v1960_v1  ;;  %v3318_v36 = vcombine.low %v1964_v5, %v1968_v10 }
 0x2fd   :  { %3960 = vperm.xlu1 %4535, %v3267_v52   ;;  %v3693_v29 = vcombine.low %v3684_v51, %v3691_v30  ;;  %v3700_v22 = vrot.slane %v3692_v6, %v5095_v46  ;;  %v3319_v40 = vcombine.low %v1972_v11, %v1976_v16  ;;  %v2148_v27 = vrot.slane %v5450_v12, %v5070_v31 }
 0x2fe   :  { %v3320_v32 = vcombine.low %v1980_v23, %v1984_v24  ;;  %v3327_v41 = vrot.slane %v3317_v50, %v5095_v46  ;;  %v3334_v47 = vrot.slane %v3318_v36, %v5095_v46  ;;  %v2152_v44 = vrot.slane %v5450_v12, %v5074_v34 }
 0x2ff   :  { %v3707_v48 = vrot.slane %v3693_v29, %v5095_v46  ;;  %v3341_v9 = vrot.slane %v3319_v40, %v5095_v46  ;;  %v2156_v58 = vrot.slane %v5450_v12, %v5077_v35  ;;  %v2160_v45 = vrot.slane %v5450_v12, %v5080_v37 }
 0x300   :  { %v3348_v25 = vrot.slane %v3320_v32, %v5095_v46  ;;  %v3349_v49 = vcombine.low %v3327_v41, %v3334_v47  ;;  %v2164_v28 = vrot.slane %v5450_v12, %v5083_v38  ;;  %v2168_v15 = vrot.slane %v5450_v12, %v5086_v39 }
 0x301   :  { %v3708_v55 = vcombine.low %v3700_v22, %v3707_v48  ;;  %v2172_v20 = vrot.slane %v5450_v12, %v5089_v42  ;;  %v2176_v53 = vrot.slane %v5450_v12, %v5092_v43  ;;  %v3611_v56 = vcombine.low %v2148_v27, %v2152_v44 }
 0x302   :  { %v3350_v57 = vcombine.low %v3341_v9, %v3348_v25  ;;  %v3357_v19 = vrot.slane %v3349_v49, %v5095_v46  ;;  %v3612_v59 = vcombine.low %v2156_v58, %v2160_v45  ;;  %v3613_v63 = vcombine.low %v2164_v28, %v2168_v15 }
 0x303   :  { %3987 = vperm.xlu0 %4536, %v3708_v55   ;;  %v3614_v54 = vcombine.low %v2172_v20, %v2176_v53  ;;  %v3621_v8 = vrot.slane %v3611_v56, %v5095_v46  ;;  %v2020_v0 = vrot.slane %v5313_v17, %v5070_v31  ;;  %v2024_v1 = vrot.slane %v5313_v17, %v5074_v34 }
 0x304   :  { %v3364_v60 = vrot.slane %v3350_v57, %v5095_v46  ;;  %v3628_v12 = vrot.slane %v3612_v59, %v5095_v46  ;;  %v3635_v62 = vrot.slane %v3613_v63, %v5095_v46  ;;  %v2028_v7 = vrot.slane %v5313_v17, %v5077_v35 }
 0x305   :  { %v3642_v33 = vrot.slane %v3614_v54, %v5095_v46  ;;  %v2032_v51 = vrot.slane %v5313_v17, %v5080_v37  ;;  %v2036_v5 = vrot.slane %v5313_v17, %v5083_v38  ;;  %v2040_v10 = vrot.slane %v5313_v17, %v5086_v39 }
 0x306   :  { %v3365_v11 = vcombine.low %v3357_v19, %v3364_v60  ;;  %v3643_v52 = vcombine.low %v3621_v8, %v3628_v12  ;;  %v2044_v30 = vrot.slane %v5313_v17, %v5089_v42  ;;  %v2048_v6 = vrot.slane %v5313_v17, %v5092_v43 }
 0x307   :  { %v3644_v16 = vcombine.low %v3635_v62, %v3642_v33  ;;  %v3415_v23 = vcombine.low %v2020_v0, %v2024_v1  ;;  %v3416_v24 = vcombine.low %v2028_v7, %v2032_v51  ;;  %v3417_v50 = vcombine.low %v2036_v5, %v2040_v10 }
 0x308   :  { %3966 = vperm.xlu1 %4535, %v3365_v11   ;;  %v3651_v36 = vrot.slane %v3643_v52, %v5095_v46  ;;  %v3418_v29 = vcombine.low %v2044_v30, %v2048_v6  ;;  %v2244_v22 = vrot.slane %v5474_v18, %v5070_v31  ;;  %v2248_v40 = vrot.slane %v5474_v18, %v5074_v34 }
 0x309   :  { %v3658_v27 = vrot.slane %v3644_v16, %v5095_v46  ;;  %v3425_v32 = vrot.slane %v3415_v23, %v5095_v46  ;;  %v3432_v17 = vrot.slane %v3416_v24, %v5095_v46  ;;  %v3439_v41 = vrot.slane %v3417_v50, %v5095_v46 }
 0x30a   :  { %v3446_v47 = vrot.slane %v3418_v29, %v5095_v46  ;;  %v2252_v44 = vrot.slane %v5474_v18, %v5077_v35  ;;  %v2256_v48 = vrot.slane %v5474_v18, %v5080_v37  ;;  %v2260_v9 = vrot.slane %v5474_v18, %v5083_v38 }
 0x30b   :  { %v3659_v58 = vcombine.low %v3651_v36, %v3658_v27  ;;  %v3447_v45 = vcombine.low %v3425_v32, %v3432_v17  ;;  %v2264_v25 = vrot.slane %v5474_v18, %v5086_v39  ;;  %v2268_v49 = vrot.slane %v5474_v18, %v5089_v42 }
 0x30c   :  { %v3448_v28 = vcombine.low %v3439_v41, %v3446_v47  ;;  %v2272_v15 = vrot.slane %v5474_v18, %v5092_v43  ;;  %v3758_v55 = vcombine.low %v2244_v22, %v2248_v40  ;;  %v3759_v20 = vcombine.low %v2252_v44, %v2256_v48 }
 0x30d   :  { %3984 = vperm.xlu0 %4536, %v3659_v58   ;;  %v3455_v53 = vrot.slane %v3447_v45, %v5095_v46  ;;  %v3760_v56 = vcombine.low %v2260_v9, %v2264_v25  ;;  %v2084_v57 = vrot.slane %v5373_v4, %v5070_v31  ;;  %v2088_v19 = vrot.slane %v5373_v4, %v5074_v34 }
 0x30e   :  { %v3462_v59 = vrot.slane %v3448_v28, %v5095_v46  ;;  %v3761_v63 = vcombine.low %v2268_v49, %v2272_v15  ;;  %v3768_v54 = vrot.slane %v3758_v55, %v5095_v46  ;;  %v3775_v8 = vrot.slane %v3759_v20, %v5095_v46 }
 0x30f   :  { %v3782_v18 = vrot.slane %v3760_v56, %v5095_v46  ;;  %v2092_v0 = vrot.slane %v5373_v4, %v5077_v35  ;;  %v2096_v1 = vrot.slane %v5373_v4, %v5080_v37  ;;  %v2100_v60 = vrot.slane %v5373_v4, %v5083_v38 }
 0x310   :  { %v3463_v12 = vcombine.low %v3455_v53, %v3462_v59  ;;  %v3789_v62 = vrot.slane %v3761_v63, %v5095_v46  ;;  %v3790_v7 = vcombine.low %v3768_v54, %v3775_v8  ;;  %v2104_v33 = vrot.slane %v5373_v4, %v5086_v39 }
 0x311   :  { %v2108_v51 = vrot.slane %v5373_v4, %v5089_v42  ;;  %v2112_v5 = vrot.slane %v5373_v4, %v5092_v43  ;;  %v3513_v10 = vcombine.low %v2084_v57, %v2088_v19  ;;  %v3514_v11 = vcombine.low %v2092_v0, %v2096_v1 }
 0x312   :  { %3972 = vperm.xlu1 %4535, %v3463_v12   ;;  %v3791_v52 = vcombine.low %v3782_v18, %v3789_v62  ;;  %v3798_v30 = vrot.slane %v3790_v7, %v5095_v46  ;;  %v3515_v6 = vcombine.low %v2100_v60, %v2104_v33  ;;  %v2212_v16 = vrot.slane %v5497_v26, %v5070_v31 }
 0x313   :  { %v3516_v23 = vcombine.low %v2108_v51, %v2112_v5  ;;  %v3523_v24 = vrot.slane %v3513_v10, %v5095_v46  ;;  %v3530_v50 = vrot.slane %v3514_v11, %v5095_v46  ;;  %v2216_v36 = vrot.slane %v5497_v26, %v5074_v34 }
 0x314   :  { %v3805_v4 = vrot.slane %v3791_v52, %v5095_v46  ;;  %v3537_v29 = vrot.slane %v3515_v6, %v5095_v46  ;;  %v2220_v22 = vrot.slane %v5497_v26, %v5077_v35  ;;  %v2224_v40 = vrot.slane %v5497_v26, %v5080_v37 }
 0x315   :  { %v3544_v27 = vrot.slane %v3516_v23, %v5095_v46  ;;  %v3545_v32 = vcombine.low %v3523_v24, %v3530_v50  ;;  %v2228_v17 = vrot.slane %v5497_v26, %v5083_v38  ;;  %v2232_v41 = vrot.slane %v5497_v26, %v5086_v39 }
 0x316   :  { %v3806_v47 = vcombine.low %v3798_v30, %v3805_v4  ;;  %v2236_v44 = vrot.slane %v5497_v26, %v5089_v42  ;;  %v2240_v48 = vrot.slane %v5497_v26, %v5092_v43  ;;  %v3709_v9 = vcombine.low %v2212_v16, %v2216_v36 }
 0x317   :  { %v3546_v58 = vcombine.low %v3537_v29, %v3544_v27  ;;  %v3553_v45 = vrot.slane %v3545_v32, %v5095_v46  ;;  %v3710_v25 = vcombine.low %v2220_v22, %v2224_v40  ;;  %v3711_v49 = vcombine.low %v2228_v17, %v2232_v41 }
 0x318   :  { %3993 = vperm.xlu0 %4536, %v3806_v47   ;;  %v3712_v28 = vcombine.low %v2236_v44, %v2240_v48  ;;  %v3719_v15 = vrot.slane %v3709_v9, %v5095_v46  ;;  %v1764_v55 = vrot.slane %v5337_v2, %v5070_v31  ;;  %v1768_v20 = vrot.slane %v5337_v2, %v5074_v34 }
 0x319   :  { %v3560_v53 = vrot.slane %v3546_v58, %v5095_v46  ;;  %v3726_v26 = vrot.slane %v3710_v25, %v5095_v46  ;;  %v3733_v56 = vrot.slane %v3711_v49, %v5095_v46  ;;  %v1772_v57 = vrot.slane %v5337_v2, %v5077_v35 }
 0x31a   :  { %v3740_v19 = vrot.slane %v3712_v28, %v5095_v46  ;;  %v1776_v59 = vrot.slane %v5337_v2, %v5080_v37  ;;  %v1780_v63 = vrot.slane %v5337_v2, %v5083_v38  ;;  %v1784_v54 = vrot.slane %v5337_v2, %v5086_v39 }
 0x31b   :  { %v3561_v8 = vcombine.low %v3553_v45, %v3560_v53  ;;  %v3741_v18 = vcombine.low %v3719_v15, %v3726_v26  ;;  %v1788_v0 = vrot.slane %v5337_v2, %v5089_v42  ;;  %v1792_v1 = vrot.slane %v5337_v2, %v5092_v43 }
 0x31c   :  { %v3742_v60 = vcombine.low %v3733_v56, %v3740_v19  ;;  %v3023_v12 = vcombine.low %v1764_v55, %v1768_v20  ;;  %v3024_v62 = vcombine.low %v1772_v57, %v1776_v59  ;;  %v3025_v7 = vcombine.low %v1780_v63, %v1784_v54 }
 0x31d   :  { %3978 = vperm.xlu1 %4535, %v3561_v8   ;;  %v3749_v33 = vrot.slane %v3741_v18, %v5095_v46  ;;  %v3026_v51 = vcombine.low %v1788_v0, %v1792_v1  ;;  %v2276_v5 = vrot.slane %v5525_v3, %v5070_v31  ;;  %v2280_v10 = vrot.slane %v5525_v3, %v5074_v34 }
 0x31e   :  { %v3756_v11 = vrot.slane %v3742_v60, %v5095_v46  ;;  %v3033_v52 = vrot.slane %v3023_v12, %v5095_v46  ;;  %v3040_v2 = vrot.slane %v3024_v62, %v5095_v46  ;;  %v3047_v30 = vrot.slane %v3025_v7, %v5095_v46 }
 0x31f   :  { %v3054_v6 = vrot.slane %v3026_v51, %v5095_v46  ;;  %v2284_v16 = vrot.slane %v5525_v3, %v5077_v35  ;;  %v2288_v23 = vrot.slane %v5525_v3, %v5080_v37  ;;  %v2292_v24 = vrot.slane %v5525_v3, %v5083_v38 }
 0x320   :  { %v3757_v50 = vcombine.low %v3749_v33, %v3756_v11  ;;  %v3055_v36 = vcombine.low %v3033_v52, %v3040_v2  ;;  %v2296_v4 = vrot.slane %v5525_v3, %v5086_v39  ;;  %v2300_v29 = vrot.slane %v5525_v3, %v5089_v42 }
 0x321   :  { %v3056_v22 = vcombine.low %v3047_v30, %v3054_v6  ;;  %v2304_v40 = vrot.slane %v5525_v3, %v5092_v43  ;;  %v3807_v27 = vcombine.low %v2276_v5, %v2280_v10  ;;  %v3808_v32 = vcombine.low %v2284_v16, %v2288_v23 }
 0x322   :  { %3990 = vperm.xlu0 %4536, %v3757_v50   ;;  %v3063_v17 = vrot.slane %v3055_v36, %v5095_v46  ;;  %v3809_v41 = vcombine.low %v2292_v24, %v2296_v4  ;;  %v1796_v47 = vrot.slane %v5367_v61, %v5070_v31  ;;  %v1800_v44 = vrot.slane %v5367_v61, %v5074_v34 }
 0x323   :  { %v3070_v48 = vrot.slane %v3056_v22, %v5095_v46  ;;  %v3810_v9 = vcombine.low %v2300_v29, %v2304_v40  ;;  %v3817_v58 = vrot.slane %v3807_v27, %v5095_v46  ;;  %v3824_v45 = vrot.slane %v3808_v32, %v5095_v46  ;;  %v3910_v29 = vpop.permute.xlu1 %3909 }
 0x324   :  { %v3831_v3 = vrot.slane %v3809_v41, %v5095_v46  ;;  %v1804_v25 = vrot.slane %v5367_v61, %v5077_v35  ;;  %v1808_v49 = vrot.slane %v5367_v61, %v5080_v37  ;;  %v1812_v28 = vrot.slane %v5367_v61, %v5083_v38 }
 0x325   :  { %v3071_v15 = vcombine.low %v3063_v17, %v3070_v48  ;;  %v3838_v55 = vrot.slane %v3810_v9, %v5095_v46  ;;  %v3839_v20 = vcombine.low %v3817_v58, %v3824_v45  ;;  %v1816_v53 = vrot.slane %v5367_v61, %v5086_v39  ;;  %v3907_v48 = vpop.permute.xlu0 %3906 }
 0x326   :  { %v1820_v26 = vrot.slane %v5367_v61, %v5089_v42  ;;  %v1824_v56 = vrot.slane %v5367_v61, %v5092_v43  ;;  %v3072_v57 = vcombine.low %v1796_v47, %v1800_v44  ;;  %v3073_v19 = vcombine.low %v1804_v25, %v1808_v49 }
 0x327   :  { %3948 = vperm.xlu1 %4535, %v3071_v15   ;;  %v3840_v59 = vcombine.low %v3831_v3, %v3838_v55  ;;  %v3847_v63 = vrot.slane %v3839_v20, %v5095_v46  ;;  %v3074_v54 = vcombine.low %v1812_v28, %v1816_v53  ;;  %v2308_v8 = vrot.slane %v5538_v13, %v5070_v31  ;;  %v5878_v22 = vpop.permute.xlu1 %3915 }
 0x328   :  { %v3075_v18 = vcombine.low %v1820_v26, %v1824_v56  ;;  %v3082_v0 = vrot.slane %v3072_v57, %v5095_v46  ;;  %v3089_v1 = vrot.slane %v3073_v19, %v5095_v46  ;;  %v2312_v60 = vrot.slane %v5538_v13, %v5074_v34 }
 0x329   :  { %v3854_v61 = vrot.slane %v3840_v59, %v5095_v46  ;;  %v3096_v12 = vrot.slane %v3074_v54, %v5095_v46  ;;  %v2316_v62 = vrot.slane %v5538_v13, %v5077_v35  ;;  %v2320_v7 = vrot.slane %v5538_v13, %v5080_v37 }
 0x32a   :  { %v3103_v31 = vrot.slane %v3075_v18, %v5095_v46  ;;  %v3104_v33 = vcombine.low %v3082_v0, %v3089_v1  ;;  %v2324_v51 = vrot.slane %v5538_v13, %v5083_v38  ;;  %v2328_v5 = vrot.slane %v5538_v13, %v5086_v39 }
 0x32b   :  { %v3855_v34 = vcombine.low %v3847_v63, %v3854_v61  ;;  %v2332_v10 = vrot.slane %v5538_v13, %v5089_v42  ;;  %v2336_v11 = vrot.slane %v5538_v13, %v5092_v43  ;;  %v3856_v35 = vcombine.low %v2308_v8, %v2312_v60  ;;  %v3913_v40 = vpop.permute.xlu1 %3912 }
 0x32c   :  { %v3105_v52 = vcombine.low %v3096_v12, %v3103_v31  ;;  %v3112_v37 = vrot.slane %v3104_v33, %v5095_v46  ;;  %v3857_v2 = vcombine.low %v2316_v62, %v2320_v7  ;;  %v3858_v30 = vcombine.low %v2324_v51, %v2328_v5 }
 0x32d   :  { %3996 = vperm.xlu0 %4536, %v3855_v34   ;;  %v3859_v6 = vcombine.low %v2332_v10, %v2336_v11  ;;  %v3866_v38 = vrot.slane %v3856_v35, %v5095_v46  ;;  %v5903_v20 = vand.u32 127, %v1313_v14 }
 0x32e   :  { %v3119_v16 = vrot.slane %v3105_v52, %v5095_v46  ;;  %v3873_v39 = vrot.slane %v3857_v2, %v5095_v46  ;;  %v3880_v23 = vrot.slane %v3858_v30, %v5095_v46 }
 0x32f   :  { %v3887_v42 = vrot.slane %v3859_v6, %v5095_v46  ;;  %v5880_v27 = vpop.permute.xlu1 %3921  ;;  %v4014_v26 = vadd.s32 4294967280, %v5903_v20  ;;  %v4007_v56 = vadd.s32 4294967288, %v5903_v20  ;;  %v4005_v19 = vsub.s32 %v5903_v20, %v5066_v21 }
 0x330   :  { %v3120_v24 = vcombine.low %v3112_v37, %v3119_v16  ;;  %v3888_v43 = vcombine.low %v3866_v38, %v3873_v39  ;;  %v4028_v54 = vadd.s32 4294967264, %v5903_v20  ;;  %v4021_v18 = vadd.s32 4294967272, %v5903_v20 }
 0x331   :  { %v3889_v13 = vcombine.low %v3880_v23, %v3887_v42  ;;  %v4017_v63 = vsub.s32 %v4014_v26, %v5066_v21  ;;  %v4010_v8 = vsub.s32 %v4007_v56, %v5066_v21  ;;  %v4035_v60 = vadd.s32 4294967256, %v5903_v20 }
 0x332   :  { %3951 = vperm.xlu1 %4535, %v3120_v24   ;;  %v3896_v50 = vrot.slane %v3888_v43, %v5095_v46  ;;  %v4006_v12 = vrot.slane %v3907_v48, %v4005_v19  ;;  %v4031_v62 = vsub.s32 %v4028_v54, %v5066_v21  ;;  %v4042_v7 = vadd.s32 4294967248, %v5903_v20 }
 0x333   :  { %v3903_v36 = vrot.slane %v3889_v13, %v5095_v46  ;;  %v5882_v32 = vpop.permute.xlu1 %3918  ;;  %v4024_v33 = vsub.s32 %v4021_v18, %v5066_v21  ;;  %v4018_v51 = vrot.slane %v3913_v40, %v4017_v63  ;;  %v4011_v10 = vrot.slane %v3910_v29, %v4010_v8 }
 0x334   :  { %v4038_v52 = vsub.s32 %v4035_v60, %v5066_v21  ;;  %v4049_v30 = vadd.s32 4294967240, %v5903_v20  ;;  %v4045_v6 = vsub.s32 %v4042_v7, %v5066_v21  ;;  %v4056_v38 = vadd.s32 4294967232, %v5903_v20 }
 0x335   :  { %v3904_v4 = vcombine.low %v3896_v50, %v3903_v36  ;;  %v4013_v2 = vsel %vm4012_vm3, %v4011_v10, %v4006_v12  ;;  %v4032_v39 = vrot.slane %v5882_v32, %v4031_v62  ;;  %v4025_v42 = vrot.slane %v5878_v22, %v4024_v33 }
 0x336   :  { %v4020_v16 = vsel %vm4019_vm6, %v4018_v51, %v4013_v2  ;;  %v4052_v29 = vsub.s32 %v4049_v30, %v5066_v21  ;;  %v4059_v40 = vsub.s32 %v4056_v38, %v5066_v21  ;;  %v4063_v32 = vadd.s32 4294967224, %v5903_v20 }
 0x337   :  { %3999 = vperm.xlu0 %4536, %v3904_v4   ;;  %v5884_v17 = vpop.permute.xlu1 %3927  ;;  %v5892_v9 = vpop.permute.xlu0 %3933  ;;  %v4027_v4 = vsel %vm4026_vm7, %v4025_v42, %v4020_v16  ;;  %v4070_v22 = vadd.s32 4294967216, %v5903_v20  ;;  %v4105_v10 = vadd.s32 4294967176, %v5903_v20 }
 0x338   :  { %v4034_v48 = vsel %vm4033_vm8, %v4032_v39, %v4027_v4 }
 0x339   :  { %v4073_v18 = vsub.s32 %v4070_v22, %v5066_v21  ;;  %v4108_v38 = vsub.s32 %v4105_v10, %v5066_v21 }
 0x33b   :  { %v5886_v41 = vpop.permute.xlu1 %3924 }
 0x33f   :  { %v5888_v47 = vpop.permute.xlu1 %3930 }
 0x343   :  { %v5890_v44 = vpop.permute.xlu1 %3939 }
 0x34a   :  { %v5894_v58 = vpop.permute.xlu1 %3936 }
 0x34b   :  { %v4074_v7 = vrot.slane %v5894_v58, %v4073_v18 }
 0x351   :  { %v3958_v45 = vpop.permute.xlu0 %3957 }
 0x352   :  { %v4119_v61 = vrot.slane %v3958_v45, %v4010_v8  ;;  %v4060_v8 = vrot.slane %v5888_v47, %v4059_v40 }
 0x357   :  { %v3964_v25 = vpop.permute.xlu0 %3963 }
 0x358   :  { %v4129_v37 = vrot.slane %v3964_v25, %v4024_v33  ;;  %v4046_v25 = vrot.slane %v5886_v41, %v4045_v6 }
 0x35d   :  { %v3970_v28 = vpop.permute.xlu0 %3969 }
 0x35e   :  { %v4139_v50 = vrot.slane %v3970_v28, %v4038_v52 }
 0x362   :  { %v5896_v3 = vpop.permute.xlu1 %3945 }
 0x367   :  { %v5900_v55 = vpop.permute.xlu0 %3975 }
 0x368   :  { %v4149_v26 = vrot.slane %v5900_v55, %v4052_v29  ;;  %v4077_v55 = vadd.s32 4294967208, %v5903_v20 }
 0x36d   :  { %v5898_v49 = vpop.permute.xlu1 %3942 }
 0x372   :  { %v5907_v57 = vpop.permute.xlu0 %3981 }
 0x377   :  { %v3955_v15 = vpop.permute.xlu1 %3954 }
 0x378   :  { %v4115_v0 = vrot.slane %v3955_v15, %v4005_v19 }
 0x37a   :  { %v4120_v5 = vsel %vm4012_vm3, %v4119_v61, %v4115_v0  ;;  %v4091_v61 = vadd.s32 4294967192, %v5903_v20 }
 0x37c   :  { %v3961_v53 = vpop.permute.xlu1 %3960  ;;  %v4094_v58 = vsub.s32 %v4091_v61, %v5066_v21 }
 0x37d   :  { %v4124_v1 = vrot.slane %v3961_v53, %v4017_v63  ;;  %v4039_v53 = vrot.slane %v5880_v27, %v4038_v52  ;;  %v4084_v63 = vadd.s32 4294967200, %v5903_v20  ;;  %v4053_v27 = vrot.slane %v5884_v17, %v4052_v29 }
 0x37e   :  { %v4098_v17 = vadd.s32 4294967184, %v5903_v20 }
 0x37f   :  { %v4125_v11 = vsel %vm4019_vm6, %v4124_v1, %v4120_v5  ;;  %v4041_v19 = vsel %vm4040_vm9, %v4039_v53, %v4034_v48  ;;  %v4087_v12 = vsub.s32 %v4084_v63, %v5066_v21 }
 0x380   :  { %v4130_v23 = vsel %vm4026_vm7, %v4129_v37, %v4125_v11  ;;  %v4048_v41 = vsel %vm4047_vm10, %v4046_v25, %v4041_v19  ;;  %v4101_v30 = vsub.s32 %v4098_v17, %v5066_v21 }
 0x381   :  { %v4055_v60 = vsel %vm4054_vm11, %v4053_v27, %v4048_v41  ;;  %v4088_v2 = vrot.slane %v5898_v49, %v4087_v12 }
 0x382   :  { %v5918_v31 = vpop.permute.xlu0 %3987  ;;  %v4062_v47 = vsel %vm4061_vm12, %v4060_v8, %v4055_v60 }
 0x387   :  { %v3967_v59 = vpop.permute.xlu1 %3966 }
 0x388   :  { %v4134_v35 = vrot.slane %v3967_v59, %v4031_v62  ;;  %v4066_v59 = vsub.s32 %v4063_v32, %v5066_v21 }
 0x38a   :  { %v4135_v24 = vsel %vm4033_vm8, %v4134_v35, %v4130_v23  ;;  %v4159_v1 = vrot.slane %v5907_v57, %v4066_v59  ;;  %v4067_v5 = vrot.slane %v5892_v9, %v4066_v59  ;;  %v4080_v57 = vsub.s32 %v4077_v55, %v5066_v21 }
 0x38b   :  { %v4140_v45 = vsel %vm4040_vm9, %v4139_v50, %v4135_v24 }
 0x38c   :  { %v3985_v43 = vpop.permute.xlu0 %3984  ;;  %v4069_v35 = vsel %vm4068_vm13, %v4067_v5, %v4062_v47  ;;  %v4169_v52 = vrot.slane %v5918_v31, %v4080_v57  ;;  %v4081_v9 = vrot.slane %v5890_v44, %v4080_v57 }
 0x38d   :  { %v4164_v33 = vrot.slane %v3985_v43, %v4073_v18  ;;  %v4076_v37 = vsel %vm4075_vm14, %v4074_v7, %v4069_v35  ;;  %v4095_v43 = vrot.slane %v5896_v3, %v4094_v58 }
 0x38e   :  { %v4083_v39 = vsel %vm4082_vm15, %v4081_v9, %v4076_v37 }
 0x38f   :  { %v4090_v42 = vsel %vm4089_vm0, %v4088_v2, %v4083_v39 }
 0x390   :  { %v4097_v44 = vsel %vm4096_vm1, %v4095_v43, %v4090_v42 }
 0x391   :  { %v3973_v34 = vpop.permute.xlu1 %3972 }
 0x392   :  { %v4144_v13 = vrot.slane %v3973_v34, %v4045_v6 }
 0x394   :  { %v4145_v15 = vsel %vm4047_vm10, %v4144_v13, %v4140_v45 }
 0x395   :  { %v4150_v54 = vsel %vm4054_vm11, %v4149_v26, %v4145_v15 }
 0x397   :  { %v3994_v56 = vpop.permute.xlu0 %3993 }
 0x398   :  { %v4179_v13 = vrot.slane %v3994_v56, %v4094_v58 }
 0x39c   :  { %v3979_v36 = vpop.permute.xlu1 %3978 }
 0x39d   :  { %v4154_v28 = vrot.slane %v3979_v36, %v4059_v40 }
 0x39f   :  { %v4155_v0 = vsel %vm4061_vm12, %v4154_v28, %v4150_v54 }
 0x3a0   :  { %v4160_v62 = vsel %vm4068_vm13, %v4159_v1, %v4155_v0 }
 0x3a1   :  { %v3991_v51 = vpop.permute.xlu0 %3990  ;;  %v4165_v11 = vsel %vm4075_vm14, %v4164_v33, %v4160_v62 }
 0x3a2   :  { %v4170_v6 = vsel %vm4082_vm15, %v4169_v52, %v4165_v11  ;;  %v4174_v20 = vrot.slane %v3991_v51, %v4087_v12 }
 0x3a4   :  { %v4175_v24 = vsel %vm4089_vm0, %v4174_v20, %v4170_v6 }
 0x3a5   :  { %v4180_v36 = vsel %vm4096_vm1, %v4179_v13, %v4175_v24 }
 0x3a6   :  { %v3949_v34 = vpop.permute.xlu1 %3948 }
 0x3a7   :  { %v4102_v31 = vrot.slane %v3949_v34, %v4101_v30 }
 0x3a9   :  { %v4104_v4 = vsel %vm4103_vm2, %v4102_v31, %v4097_v44 }
 0x3ac   :  { %v3997_v16 = vpop.permute.xlu0 %3996 }
 0x3ad   :  { %v4184_v50 = vrot.slane %v3997_v16, %v4101_v30 }
 0x3af   :  { %v4185_v48 = vsel %vm4103_vm2, %v4184_v50, %v4180_v36 }
 0x3b1   :  { %v3952_v23 = vpop.permute.xlu1 %3951 }
 0x3b2   :  { %v4109_v49 = vrot.slane %v3952_v23, %v4108_v38 }
 0x3b4   :  { %v4111_v21 = vsel %vm4110_vm4, %v4109_v49, %v4104_v4 }
 0x3b6   :  { %v4000_v29 = vpop.permute.xlu0 %3999 }
 0x3b7   :  { %v4189_v40 = vrot.slane %v4000_v29, %v4108_v38 }
 0x3b9   :  { %v4190_v32 = vsel %vm4110_vm4, %v4189_v40, %v4185_v48 }
 0x3ba   :  { %v4191_v45 = vcombine.low %v4111_v21, %v4190_v32 }
 0x3bc   :  { %v4198_v25 = vrot.slane %v4191_v45, %v5095_v46 }
 0x3be   :  { %v4205_v3 = vrot.slane %v4198_v25, %v5095_v46 }
 0x3c0   :  { %4211 = vst.msk [vmem:[%s5978_s7] sm:$0x3] %vm4209_vm5, %v4205_v3 }

</bundles_post_ra>
